<compile_context>
chip_gen: v7x
topology: tpu7x:2x2x1
jax: 0.10.0
libtpu: 0.0.40
codegen_flags: <defaults>
</compile_context>

<pallas_src>
import functools

import numpy as np
import jax
import jax.numpy as jnp
from jax.experimental import pallas as pl
from jax.experimental.pallas import tpu as pltpu


@functools.lru_cache(maxsize=1)
def _vmem_limit_bytes():
    """Generation-aware scoped-VMEM limit (~70% of physical, clamped)."""
    cap = None
    try:
        cap = getattr(pltpu.get_tpu_info(), "vmem_capacity_bytes", None)
    except Exception:
        cap = None
    if not cap:
        cap = 64 * 1024 * 1024            # conservative default (v7x per-core VMEM)
    return int(min(max(0.7 * cap, 32 * 1024 * 1024), 96 * 1024 * 1024))


# ---------------------------------------------------------------------------
# Kernel A: fused BN1 -> ReLU -> Conv3d(1x1x1) -> BN2 -> ReLU
# Operates on the flattened (N*D*H*W, C_in) view; 1x1x1 conv == matmul.
# bf16 MXU operands, f32 accumulation, f32 element-wise math, bf16 output.
# ---------------------------------------------------------------------------
def _stage1_kernel(x_ref, s1_ref, b1_ref, w_ref, s2_ref, b2_ref, o_ref):
    a = jnp.maximum(x_ref[...] * s1_ref[...] + b1_ref[...], 0.0)
    y = jnp.dot(a.astype(jnp.bfloat16), w_ref[...],
                preferred_element_type=jnp.float32)
    o_ref[...] = jnp.maximum(y * s2_ref[...] + b2_ref[...], 0.0).astype(o_ref.dtype)


def _pick_tm(m, cin, cmid, vmem_limit):
    """Stage A is HBM-bound: size the row tile from the VMEM budget
    (double-buffered f32 input + bf16 output per row), cap at 32768 rows."""
    per_row = 2 * (4 * cin + 2 * cmid)          # bytes/row, x2 for double buffering
    tm = (vmem_limit // 2) // max(per_row, 1)
    tm = min(tm, 32768)
    if tm >= m:
        return m
    return max(8, (tm // 8) * 8)


def _stage1(x2d, s1, b1, w1, s2, b2):
    m, cin = x2d.shape
    cmid = w1.shape[1]
    vlim = _vmem_limit_bytes()
    tm = _pick_tm(m, cin, cmid, vlim)
    return pl.pallas_call(
        _stage1_kernel,
        out_shape=jax.ShapeDtypeStruct((m, cmid), jnp.bfloat16),
        grid_spec=pltpu.PrefetchScalarGridSpec(
            num_scalar_prefetch=0,
            grid=(pl.cdiv(m, tm),),             # ragged tail handled by Pallas masking
            in_specs=[
                pl.BlockSpec((tm, cin), lambda i: (i, 0)),
                pl.BlockSpec((1, cin), lambda i: (0, 0)),
                pl.BlockSpec((1, cin), lambda i: (0, 0)),
                pl.BlockSpec((cin, cmid), lambda i: (0, 0)),
                pl.BlockSpec((1, cmid), lambda i: (0, 0)),
                pl.BlockSpec((1, cmid), lambda i: (0, 0)),
            ],
            out_specs=pl.BlockSpec((tm, cmid), lambda i: (i, 0)),
        ),
        compiler_params=pltpu.CompilerParams(
            dimension_semantics=("parallel",),
            vmem_limit_bytes=vlim),
    )(x2d, s1.reshape(1, -1), b1.reshape(1, -1), w1,
      s2.reshape(1, -1), b2.reshape(1, -1))


# ---------------------------------------------------------------------------
# Kernel B: Conv3d(3x3x3) + fused BN3 -> ReLU -> Conv3d(1x1x1) epilogue.
#
# grid = (N, D): one (H*W, out_c) output plane per step.  a2 stays in HBM
# (pl.ANY) and is streamed ONCE via a manual rolling ring of depth planes
# (2*dil+2 slots, one plane prefetched per step).  Each needed depth tap is
# copied into a zero-bordered slab; the 9 spatial taps are static row-shifted
# slices of it, contracted on the MXU.
# ---------------------------------------------------------------------------
def _conv_fused_kernel(a2_ref, w2_ref, ml_ref, mr_ref, s3_ref, b3_ref, w3_ref,
                       o_ref, ring_ref, sem_ref, slab_ref, acc_ref,
                       *, dil, h, w, d_in, mid_c):
    b = pl.program_id(0)
    d = pl.program_id(1)
    hw = h * w
    fill = dil * w + dil                    # zero-border rows above/below the plane
    ring = 2 * dil + 2                      # depth window (2*dil+1) + 1 prefetch slot

    def plane_copy(plane, slot):
        return pltpu.make_async_copy(a2_ref.at[b, plane], ring_ref.at[slot],
                                     sem_ref.at[slot])

    warm = list(range(min(dil + 1, d_in)))      # planes needed at d == 0
    lead_at_0 = dil if dil < d_in else -1       # this one is waited by the generic wait

    # --- depth-ring warm-up: runs once per (core, batch image) ----------------
    @pl.when(d == 0)
    def _():
        # zero ONLY the slab's pad-border strips; the interior is rewritten per tap.
        slab_ref[pl.ds(0, fill), :] = jnp.zeros((fill, mid_c), slab_ref.dtype)
        slab_ref[pl.ds(fill + hw, fill), :] = jnp.zeros((fill, mid_c), slab_ref.dtype)
        for p in warm:
            plane_copy(p, p % ring).start()

    # prefetch the single new plane the NEXT depth step needs (1x HBM read of a2).
    nxt = d + dil + 1

    @pl.when(nxt < d_in)
    def _():
        plane_copy(nxt, nxt % ring).start()

    # waits: every DMA started above is waited exactly once.
    @pl.when(d == 0)
    def _():
        for p in warm:
            if p != lead_at_0:
                plane_copy(p, p % ring).wait()

    @pl.when(d + dil < d_in)
    def _():
        lead = d + dil
        plane_copy(lead, lead % ring).wait()

    # hoisted boolean W-edge masks (select, not bf16 multiply; broadcast once).
    ml_b = jnp.broadcast_to(ml_ref[...] > 0.0, (hw, mid_c))
    mr_b = jnp.broadcast_to(mr_ref[...] > 0.0, (hw, mid_c))

    def tap(kh, kw):
        base = (kh * w + kw) * dil
        s = slab_ref[pl.ds(base, hw), :]                  # (hw, mid_c) bf16
        if kw == 0:
            s = jnp.where(ml_b, s, 0.0)                   # kill left W-edge wrap
        elif kw == 2:
            s = jnp.where(mr_b, s, 0.0)                   # kill right W-edge wrap
        return s

    def depth_tap(plane, kd):
        # copy this depth plane from the ring into the zero-bordered slab interior.
        slab_ref[pl.ds(fill, hw), :] = ring_ref[plane % ring]
        if mid_c >= 128:
            # large mid_c: 3 MXU passes with K = 3*mid_c (skip the 9-wide concat).
            out = None
            for kh in range(3):
                blk = jnp.concatenate([tap(kh, kw) for kw in range(3)], axis=-1)
                wk = w2_ref[kd, pl.ds(kh * 3 * mid_c, 3 * mid_c), :]
                part = jnp.dot(blk, wk, preferred_element_type=jnp.float32)
                out = part if out is None else out + part
            return out
        # small mid_c: single large-K contraction.
        im2col = jnp.concatenate(
            [tap(kh, kw) for kh in range(3) for kw in range(3)], axis=-1)
        return jnp.dot(im2col, w2_ref[kd], preferred_element_type=jnp.float32)

    # center depth tap is always in range; boundary taps are pl.when-gated so the
    # depth edges skip the MXU pass entirely.
    acc_ref[...] = depth_tap(d, 1)

    @pl.when(d - dil >= 0)
    def _():
        acc_ref[...] += depth_tap(d - dil, 0)

    @pl.when(d + dil < d_in)
    def _():
        acc_ref[...] += depth_tap(d + dil, 2)

    # fused BN3 -> ReLU -> Conv3d(1x1x1) epilogue (saves an HBM round trip of y2).
    a3 = jnp.maximum(acc_ref[...] * s3_ref[...] + b3_ref[...], 0.0)
    y = jnp.dot(a3.astype(jnp.bfloat16), w3_ref[...],
                preferred_element_type=jnp.float32)
    o_ref[0, 0] = y.astype(o_ref.dtype)


def _conv_bn_relu_conv(a2, w2r, masks, s3, b3, w3, n, d, h, w, dil):
    mid_c = a2.shape[-1]
    out_c = w3.shape[1]
    hw = h * w
    fill = dil * w + dil
    slab_rows = hw + 2 * fill
    ring = 2 * dil + 2
    ml, mr = masks

    kernel = functools.partial(_conv_fused_kernel, dil=dil, h=h, w=w,
                               d_in=d, mid_c=mid_c)
    return pl.pallas_call(
        kernel,
        out_shape=jax.ShapeDtypeStruct((n, d, hw, out_c), jnp.float32),
        grid_spec=pltpu.PrefetchScalarGridSpec(
            num_scalar_prefetch=0,
            grid=(n, d),
            in_specs=[
                pl.BlockSpec(memory_space=pl.ANY),                       # a2 in HBM
                pl.BlockSpec((3, 9 * mid_c, mid_c), lambda b, dd: (0, 0, 0)),
                pl.BlockSpec((hw, 1), lambda b, dd: (0, 0)),
                pl.BlockSpec((hw, 1), lambda b, dd: (0, 0)),
                pl.BlockSpec((1, mid_c), lambda b, dd: (0, 0)),
                pl.BlockSpec((1, mid_c), lambda b, dd: (0, 0)),
                pl.BlockSpec((mid_c, out_c), lambda b, dd: (0, 0)),
            ],
            out_specs=pl.BlockSpec((1, 1, hw, out_c), lambda b, dd: (b, dd, 0, 0)),
            scratch_shapes=[
                pltpu.VMEM((ring, hw, mid_c), a2.dtype),          # depth-plane ring
                pltpu.SemaphoreType.DMA((ring,)),
                pltpu.VMEM((slab_rows, mid_c), a2.dtype),         # zero-bordered slab
                pltpu.VMEM((hw, mid_c), jnp.float32),             # conv accumulator
            ],
        ),
        compiler_params=pltpu.CompilerParams(
            dimension_semantics=("parallel", "arbitrary"),
            vmem_limit_bytes=_vmem_limit_bytes()),
    )(a2, w2r, ml, mr, s3.reshape(1, -1), b3.reshape(1, -1), w3)


# ---------------------------------------------------------------------------
# Optional lane-density padding of the bottleneck (mid) channels.
# Exact: padded scales/shifts/weights are zero, so padded activations stay 0.
# ---------------------------------------------------------------------------
def _maybe_pad_mid(p):
    mid_c = p["w1"].shape[1]
    if mid_c % 128 == 0 or mid_c < 64:        # only pad when overhead <= 2x
        return p
    pad = ((mid_c + 127) // 128) * 128 - mid_c
    q = dict(p)
    q["w1"] = jnp.pad(p["w1"], ((0, 0), (0, pad)))
    q["s2"] = jnp.pad(p["s2"], (0, pad))
    q["b2"] = jnp.pad(p["b2"], (0, pad))
    q["w2"] = jnp.pad(p["w2"], ((0, 0), (0, 0), (0, 0), (0, pad), (0, pad)))
    q["s3"] = jnp.pad(p["s3"], (0, pad))
    q["b3"] = jnp.pad(p["b3"], (0, pad))
    q["w3"] = jnp.pad(p["w3"], ((0, pad), (0, 0)))
    return q


# ---------------------------------------------------------------------------
# Full block forward (glue in plain JAX: transposes / free reshapes only)
# ---------------------------------------------------------------------------
def conv_block_forward(x_ncdhw, p, dilation=1):
    x = jnp.transpose(x_ncdhw, (0, 2, 3, 4, 1))            # NCDHW -> NDHWC
    n, d, h, w, cin = x.shape
    assert 1 <= dilation < w
    p = _maybe_pad_mid(p)
    mid_c = p["w1"].shape[1]
    out_c = p["w3"].shape[1]
    m = n * d * h * w

    # stage 1: BN1-ReLU-Conv1x1-BN2-ReLU (bf16 intermediate halves HBM traffic)
    a2 = _stage1(x.reshape(m, cin), p["s1"], p["b1"], p["w1"], p["s2"], p["b2"])
    a2 = a2.reshape(n, d, h * w, mid_c)                    # free row-major reshape

    # stage 2+3: Conv3x3x3 with fused BN3-ReLU-Conv1x1 epilogue
    w2r = p["w2"].reshape(3, 9 * mid_c, mid_c)             # (kd, kh*kw*cin, cout)
    col = np.arange(h * w, dtype=np.int32) % w
    ml = jnp.asarray((col >= dilation).astype(np.float32).reshape(h * w, 1))
    mr = jnp.asarray((col < w - dilation).astype(np.float32).reshape(h * w, 1))
    y = _conv_bn_relu_conv(a2, w2r, (ml, mr), p["s3"], p["b3"], p["w3"],
                           n, d, h, w, dilation)
    out = y.reshape(n, d, h, w, out_c)
    return jnp.transpose(out, (0, 4, 1, 2, 3))             # NDHWC -> NCDHW


# ---------------------------------------------------------------------------
# Deterministic parameter init (shapes from the module __init__)
# ---------------------------------------------------------------------------
def init_params(key, in_c, out_c, eps=1e-5):
    mid_c = out_c // 4
    ks = jax.random.split(key, 12)

    def bn(kg, kb, km, kv, c):
        gamma = 1.0 + 0.1 * jax.random.normal(kg, (c,), jnp.float32)
        beta = 0.1 * jax.random.normal(kb, (c,), jnp.float32)
        mean = 0.1 * jax.random.normal(km, (c,), jnp.float32)
        var = jax.random.uniform(kv, (c,), jnp.float32, minval=0.5, maxval=1.5)
        scale = gamma / jnp.sqrt(var + eps)
        shift = beta - mean * scale
        return scale, shift

    s1, b1 = bn(ks[0], ks[1], ks[2], ks[3], in_c)
    s2, b2 = bn(ks[4], ks[5], ks[6], ks[7], mid_c)
    s3, b3 = bn(ks[8], ks[9], ks[10], ks[11], mid_c)

    kw = jax.random.split(jax.random.fold_in(key, 1), 3)
    # Conv weights in kernel-friendly layouts and bf16 (MXU operand dtype):
    #   1x1x1 convs as (C_in, C_out); 3x3x3 conv as (kD, kH, kW, C_in, C_out).
    w1 = (0.3 * jax.random.normal(kw[0], (in_c, mid_c), jnp.float32)).astype(jnp.bfloat16)
    w2 = (0.3 * jax.random.normal(kw[1], (3, 3, 3, mid_c, mid_c), jnp.float32)).astype(jnp.bfloat16)
    w3 = (0.3 * jax.random.normal(kw[2], (mid_c, out_c), jnp.float32)).astype(jnp.bfloat16)
    return dict(s1=s1, b1=b1, s2=s2, b2=b2, s3=s3, b3=b3, w1=w1, w2=w2, w3=w3)


# ---------------------------------------------------------------------------
# Pure-JAX reference with the SAME precision policy as the kernels
# (bf16 MXU operands, f32 accumulation / element-wise math, bf16 a2).
# ---------------------------------------------------------------------------
def reference_forward(x_ncdhw, p, dilation=1):
    x = jnp.transpose(x_ncdhw, (0, 2, 3, 4, 1))
    a1 = jnp.maximum(x * p["s1"] + p["b1"], 0.0)
    y1 = jnp.einsum("ndhwc,cf->ndhwf", a1.astype(jnp.bfloat16), p["w1"],
                    preferred_element_type=jnp.float32)
    a2 = jnp.maximum(y1 * p["s2"] + p["b2"], 0.0).astype(jnp.bfloat16)
    y2 = jax.lax.conv_general_dilated(
        a2, p["w2"], window_strides=(1, 1, 1),
        padding=[(dilation, dilation)] * 3,
        rhs_dilation=(dilation,) * 3,
        dimension_numbers=("NDHWC", "DHWIO", "NDHWC"),
        preferred_element_type=jnp.float32)
    a3 = jnp.maximum(y2 * p["s3"] + p["b3"], 0.0)
    y3 = jnp.einsum("ndhwc,cf->ndhwf", a3.astype(jnp.bfloat16), p["w3"],
                    preferred_element_type=jnp.float32)
    return jnp.transpose(y3, (0, 4, 1, 2, 3))


if __name__ == "__main__":
    key = jax.random.PRNGKey(0)
    in_c, out_c = 8, 16          # mid_c = out_c // 4 = 4
    n, d, h, w = 2, 8, 8, 8

    kx, kp = jax.random.split(key)
    x = jax.random.normal(kx, (n, in_c, d, h, w), jnp.float32)   # NCDHW
    params = init_params(kp, in_c, out_c)

    out = jax.block_until_ready(conv_block_forward(x, params, dilation=1))
    assert out.shape == (n, out_c, d, h, w), out.shape

    ref = reference_forward(x, params, dilation=1)
    np.testing.assert_allclose(np.asarray(out), np.asarray(ref),
                               rtol=2e-2, atol=2e-2)
    print("KERNEL_OK")
</pallas_src>

<mosaic_0001>
module attributes {stable_mosaic.version = 11 : i64} {
  func.func @_stage1_kernel(%arg0: i32, %arg1: memref<1024x8xf32, #tpu.memory_space<vmem>>, %arg2: memref<1x8xf32, #tpu.memory_space<vmem>>, %arg3: memref<1x8xf32, #tpu.memory_space<vmem>>, %arg4: memref<8x4xbf16, #tpu.memory_space<vmem>>, %arg5: memref<1x4xf32, #tpu.memory_space<vmem>>, %arg6: memref<1x4xf32, #tpu.memory_space<vmem>>, %arg7: memref<1024x4xbf16, #tpu.memory_space<vmem>>) attributes {dimension_semantics = [#tpu.dimension_semantics<parallel>], iteration_bounds = array<i64: 1>, scalar_prefetch = 0 : i64, scratch_operands = 0 : i64, tpu.core_type = #tpu.core_type<tc>, window_params = [{transform_indices = @transform_0, window_bounds = array<i64: 1024, 8>}, {pipeline_mode = #tpu.pipeline_mode<synchronous>, transform_indices = @transform_1, window_bounds = array<i64: 1, 8>}, {pipeline_mode = #tpu.pipeline_mode<synchronous>, transform_indices = @transform_2, window_bounds = array<i64: 1, 8>}, {pipeline_mode = #tpu.pipeline_mode<synchronous>, transform_indices = @transform_3, window_bounds = array<i64: 8, 4>}, {pipeline_mode = #tpu.pipeline_mode<synchronous>, transform_indices = @transform_4, window_bounds = array<i64: 1, 4>}, {pipeline_mode = #tpu.pipeline_mode<synchronous>, transform_indices = @transform_5, window_bounds = array<i64: 1, 4>}, {transform_indices = @transform_6, window_bounds = array<i64: 1024, 4>}]} {
    %c0 = arith.constant 0 : index
    %c0_0 = arith.constant 0 : index
    %0 = vector.load %arg1[%c0, %c0_0] : memref<1024x8xf32, #tpu.memory_space<vmem>>, vector<1024x8xf32>
    %c0_1 = arith.constant 0 : index
    %c0_2 = arith.constant 0 : index
    %1 = vector.load %arg2[%c0_1, %c0_2] : memref<1x8xf32, #tpu.memory_space<vmem>>, vector<1x8xf32>
    %2 = vector.broadcast %1 : vector<1x8xf32> to vector<1024x8xf32>
    %3 = arith.mulf %0, %2 : vector<1024x8xf32>
    %c0_3 = arith.constant 0 : index
    %c0_4 = arith.constant 0 : index
    %4 = vector.load %arg3[%c0_3, %c0_4] : memref<1x8xf32, #tpu.memory_space<vmem>>, vector<1x8xf32>
    %5 = vector.broadcast %4 : vector<1x8xf32> to vector<1024x8xf32>
    %6 = arith.addf %3, %5 : vector<1024x8xf32>
    %cst = arith.constant 0.000000e+00 : f32
    %7 = vector.broadcast %cst : f32 to vector<1024x8xf32>
    %8 = arith.maximumf %6, %7 : vector<1024x8xf32>
    %9 = arith.truncf %8 : vector<1024x8xf32> to vector<1024x8xbf16>
    %c0_5 = arith.constant 0 : index
    %c0_6 = arith.constant 0 : index
    %10 = vector.load %arg4[%c0_5, %c0_6] : memref<8x4xbf16, #tpu.memory_space<vmem>>, vector<8x4xbf16>
    %cst_7 = arith.constant dense<0.000000e+00> : vector<1024x4xf32>
    %11 = tpu.matmul %9, %10, %cst_7 {dimension_numbers = #tpu.dot_dimension_numbers<[1], [0], [0], [1], [0, 0, 1, 1], [], []>} : vector<1024x8xbf16>, vector<8x4xbf16>, vector<1024x4xf32> -> vector<1024x4xf32>
    %c0_8 = arith.constant 0 : index
    %c0_9 = arith.constant 0 : index
    %12 = vector.load %arg5[%c0_8, %c0_9] : memref<1x4xf32, #tpu.memory_space<vmem>>, vector<1x4xf32>
    %13 = vector.broadcast %12 : vector<1x4xf32> to vector<1024x4xf32>
    %14 = arith.mulf %11, %13 : vector<1024x4xf32>
    %c0_10 = arith.constant 0 : index
    %c0_11 = arith.constant 0 : index
    %15 = vector.load %arg6[%c0_10, %c0_11] : memref<1x4xf32, #tpu.memory_space<vmem>>, vector<1x4xf32>
    %16 = vector.broadcast %15 : vector<1x4xf32> to vector<1024x4xf32>
    %17 = arith.addf %14, %16 : vector<1024x4xf32>
    %cst_12 = arith.constant 0.000000e+00 : f32
    %18 = vector.broadcast %cst_12 : f32 to vector<1024x4xf32>
    %19 = arith.maximumf %17, %18 : vector<1024x4xf32>
    %20 = arith.truncf %19 : vector<1024x4xf32> to vector<1024x4xbf16>
    %c0_13 = arith.constant 0 : index
    %c0_14 = arith.constant 0 : index
    %21 = vector.load %arg7[%c0_13, %c0_14] : memref<1024x4xbf16, #tpu.memory_space<vmem>>, vector<1024x4xbf16>
    tpu.vector_store %arg7[%c0_13, %c0_14], %20 {strides = array<i32>} : memref<1024x4xbf16, #tpu.memory_space<vmem>>, vector<1024x4xbf16>,
    return
  }
  func.func @transform_0(%arg0: i32) -> (i32, i32) {
    %c0_i32 = arith.constant 0 : i32
    %c0_i32_0 = arith.constant 0 : i32
    return %arg0, %c0_i32 : i32, i32
  }
  func.func @transform_1(%arg0: i32) -> (i32, i32) {
    %c0_i32 = arith.constant 0 : i32
    %c0_i32_0 = arith.constant 0 : i32
    %c0_i32_1 = arith.constant 0 : i32
    return %c0_i32, %c0_i32_0 : i32, i32
  }
  func.func @transform_2(%arg0: i32) -> (i32, i32) {
    %c0_i32 = arith.constant 0 : i32
    %c0_i32_0 = arith.constant 0 : i32
    %c0_i32_1 = arith.constant 0 : i32
    return %c0_i32, %c0_i32_0 : i32, i32
  }
  func.func @transform_3(%arg0: i32) -> (i32, i32) {
    %c0_i32 = arith.constant 0 : i32
    %c0_i32_0 = arith.constant 0 : i32
    %c0_i32_1 = arith.constant 0 : i32
    return %c0_i32, %c0_i32_0 : i32, i32
  }
  func.func @transform_4(%arg0: i32) -> (i32, i32) {
    %c0_i32 = arith.constant 0 : i32
    %c0_i32_0 = arith.constant 0 : i32
    %c0_i32_1 = arith.constant 0 : i32
    return %c0_i32, %c0_i32_0 : i32, i32
  }
  func.func @transform_5(%arg0: i32) -> (i32, i32) {
    %c0_i32 = arith.constant 0 : i32
    %c0_i32_0 = arith.constant 0 : i32
    %c0_i32_1 = arith.constant 0 : i32
    return %c0_i32, %c0_i32_0 : i32, i32
  }
  func.func @transform_6(%arg0: i32) -> (i32, i32) {
    %c0_i32 = arith.constant 0 : i32
    %c0_i32_0 = arith.constant 0 : i32
    return %arg0, %c0_i32 : i32, i32
  }
}

</mosaic_0001>

<bundles_post_ra>
// kernel: tpu_custom_call.1
= control target key start
LH: loop header
LB: loop body
LE: loop exit
PB: predicated region body
PF: predicated region fallthrough
CT: control target
= control target key end

     0   :  { %vm808_vm0 = vcmask 1043456   ;;  %vm615_vm1 = vcmask 64512   ;;  %vm2267_vm2 = vcmask 27648   ;;  %s4477_s3 = inlined_call_operand.vmem [shape: bf16[8,4], index: 3, kind: input, shape index: {}]   ;;  %s4478_s0 = inlined_call_operand.vmem [shape: f32[1024,8], index: 0, kind: input, shape index: {}]   ;;  %s4479_s1 = inlined_call_operand.vmem [shape: f32[1,8], index: 1, kind: input, shape index: {}]   ;;  %s4480_s2 = inlined_call_operand.vmem [shape: f32[1,8], index: 2, kind: input, shape index: {}]   ;;  %s4481_s4 = inlined_call_operand.vmem [shape: f32[1,4], index: 4, kind: input, shape index: {}]   ;;  %s4482_s5 = inlined_call_operand.vmem [shape: f32[1,4], index: 5, kind: input, shape index: {}]   ;;  %s4483_s6 = inlined_call_operand.vmem [shape: bf16[1024,4], index: 6, kind: output, shape index: {}]  }
   0x1   :  { %v614_v0 = vld [vmem:[%s4477_s3] sm:$0xf]  ;;  %v25_v2 = vld [vmem:[%s4478_s0 + $0x8] sm:$0xff]  ;;  %v26_v11 = vld [vmem:[%s4478_s0 + $0x10] sm:$0xff] }
   0x2   :  { %v24_v1 = vld [vmem:[%s4478_s0] sm:$0xff]  ;;  %2921 = vmatprep.subr.msk.bf16.mxu0 %vm808_vm0, %v614_v0  ;;  %2922 = vmatprep.subr.msk.bf16.mxu1 %vm808_vm0, %v614_v0  ;;  %v810_v3 = vsel %vm808_vm0, %v614_v0, 0  ;;  %v89_v9 = vld [vmem:[%s4478_s0 + $0x208] sm:$0xff]  ;;  %v27_v12 = vld [vmem:[%s4478_s0 + $0x18] sm:$0xff] }
   0x3   :  { %v2974_v4 = vld [vmem:[%s4479_s1] ss:$0 sm:$0xff]  ;;  %2790 = vmatpush3.bf16.msra.mxu0 %v810_v3  ;;  %2920 = vmatpush3.bf16.msra.mxu1 %v810_v3  ;;  %v90_v16 = vld [vmem:[%s4478_s0 + $0x210] sm:$0xff]  ;;  %v91_v17 = vld [vmem:[%s4478_s0 + $0x218] sm:$0xff] }
   0x4   :  { %v2979_v5 = vld [vmem:[%s4480_s2] ss:$0 sm:$0xff]  ;;  %v159_v7 = vmul.f32 %v2974_v4, %v24_v1  ;;  %v160_v8 = vmul.f32 %v2974_v4, %v25_v2  ;;  %v224_v13 = vmul.f32 %v2974_v4, %v89_v9  ;;  %v161_v14 = vmul.f32 %v2974_v4, %v26_v11  ;;  %v29_v27 = vld [vmem:[%s4478_s0 + $0x28] sm:$0xff]  ;;  %v30_v38 = vld [vmem:[%s4478_s0 + $0x30] sm:$0xff] }
   0x5   :  { %v88_v6 = vld [vmem:[%s4478_s0 + $0x200] sm:$0xff]  ;;  %v162_v15 = vmul.f32 %v2974_v4, %v27_v12  ;;  %v225_v21 = vmul.f32 %v2974_v4, %v90_v16  ;;  %v226_v25 = vmul.f32 %v2974_v4, %v91_v17  ;;  %v93_v37 = vld [vmem:[%s4478_s0 + $0x228] sm:$0xff]  ;;  %v164_v42 = vmul.f32 %v2974_v4, %v29_v27  ;;  %v31_v43 = vld [vmem:[%s4478_s0 + $0x38] sm:$0xff] }
   0x6   :  { %v223_v10 = vmul.f32 %v2974_v4, %v88_v6  ;;  %v294_v18 = vadd.f32 %v2979_v5, %v159_v7  ;;  %v295_v19 = vadd.f32 %v2979_v5, %v160_v8  ;;  %v359_v22 = vadd.f32 %v2979_v5, %v224_v13  ;;  %v28_v26 = vld [vmem:[%s4478_s0 + $0x20] sm:$0xff]  ;;  %v94_v52 = vld [vmem:[%s4478_s0 + $0x230] sm:$0xff]  ;;  %v95_v53 = vld [vmem:[%s4478_s0 + $0x238] sm:$0xff] }
   0x7   :  { %v296_v23 = vadd.f32 %v2979_v5, %v161_v14  ;;  %v297_v24 = vadd.f32 %v2979_v5, %v162_v15  ;;  %v360_v31 = vadd.f32 %v2979_v5, %v225_v21  ;;  %v92_v32 = vld [vmem:[%s4478_s0 + $0x220] sm:$0xff]  ;;  %v361_v36 = vadd.f32 %v2979_v5, %v226_v25  ;;  %v33_v62 = vld [vmem:[%s4478_s0 + $0x48] sm:$0xff]  ;;  %v34_v15 = vld [vmem:[%s4478_s0 + $0x50] sm:$0xff] }
   0x8   :  { %v358_v20 = vadd.f32 %v2979_v5, %v223_v10  ;;  %v422_v28 = vmax.f32 %v294_v18, 0.0  ;;  %v423_v29 = vmax.f32 %v295_v19, 0.0  ;;  %v487_v33 = vmax.f32 %v359_v22, 0.0  ;;  %v32_v57 = vld [vmem:[%s4478_s0 + $0x40] sm:$0xff]  ;;  %v97_v6 = vld [vmem:[%s4478_s0 + $0x248] sm:$0xff]  ;;  %v98_v21 = vld [vmem:[%s4478_s0 + $0x250] sm:$0xff] }
   0x9   :  { %v424_v34 = vmax.f32 %v296_v23, 0.0  ;;  %v425_v35 = vmax.f32 %v297_v24, 0.0  ;;  %v488_v40 = vmax.f32 %v360_v31, 0.0  ;;  %v163_v41 = vmul.f32 %v2974_v4, %v28_v26  ;;  %v96_v3 = vld [vmem:[%s4478_s0 + $0x240] sm:$0xff]  ;;  %v99_v26 = vld [vmem:[%s4478_s0 + $0x258] sm:$0xff] }
   0xa   :  { %v486_v30 = vmax.f32 %v358_v20, 0.0  ;;  %v550_v39 = vpack.c.bf16 %v423_v29, %v422_v28  ;;  %v489_v46 = vmax.f32 %v361_v36, 0.0  ;;  %v227_v47 = vmul.f32 %v2974_v4, %v92_v32  ;;  %v35_v20 = vld [vmem:[%s4478_s0 + $0x58] sm:$0xff]  ;;  %v36_v31 = vld [vmem:[%s4478_s0 + $0x60] sm:$0xff]  ;;  %v37_v36 = vld [vmem:[%s4478_s0 + $0x68] sm:$0xff] }
   0xb   :  { %v551_v45 = vpack.c.bf16 %v425_v35, %v424_v34  ;;  %v298_v48 = vadd.f32 %v2979_v5, %v163_v41  ;;  %v299_v49 = vadd.f32 %v2979_v5, %v164_v42  ;;  %v228_v50 = vmul.f32 %v2974_v4, %v93_v37  ;;  %v100_v41 = vld [vmem:[%s4478_s0 + $0x260] sm:$0xff] }
   0xc   :  { %v582_v44 = vpack.c.bf16 %v487_v33, %v486_v30  ;;  %2791 = vmatprep.mubr.msk.bf16.mxu0 %vm615_vm1, %v550_v39  ;;  %v165_v51 = vmul.f32 %v2974_v4, %v30_v38  ;;  %v583_v54 = vpack.c.bf16 %v489_v46, %v488_v40  ;;  %v362_v55 = vadd.f32 %v2979_v5, %v227_v47  ;;  %v101_v46 = vld [vmem:[%s4478_s0 + $0x268] sm:$0xff]  ;;  %v38_v47 = vld [vmem:[%s4478_s0 + $0x70] sm:$0xff] }
   0xd   :  { %2792 = vmatmul.mubr.msk.bf16.vlgmr.msra.gmra.mrb[0].mxu0 %vm615_vm1, %v551_v45  ;;  %v166_v56 = vmul.f32 %v2974_v4, %v31_v43  ;;  %v426_v58 = vmax.f32 %v298_v48, 0.0  ;;  %v427_v59 = vmax.f32 %v299_v49, 0.0  ;;  %v363_v60 = vadd.f32 %v2979_v5, %v228_v50 }
   0xe   :  { %2855 = vmatprep.mubr.msk.bf16.mxu1 %vm615_vm1, %v582_v44  ;;  %v300_v61 = vadd.f32 %v2979_v5, %v165_v51  ;;  %v490_v63 = vmax.f32 %v362_v55, 0.0  ;;  %v229_v1 = vmul.f32 %v2974_v4, %v94_v52  ;;  %v230_v2 = vmul.f32 %v2974_v4, %v95_v53  ;;  %v39_v52 = vld [vmem:[%s4478_s0 + $0x78] sm:$0xff] }
   0xf   :  { %2856 = vmatmul.mubr.msk.bf16.vlgmr.msra.gmra.mrb[0].mxu1 %vm615_vm1, %v583_v54  ;;  %v301_v0 = vadd.f32 %v2979_v5, %v166_v56  ;;  %v552_v7 = vpack.c.bf16 %v427_v59, %v426_v58  ;;  %v491_v8 = vmax.f32 %v363_v60, 0.0  ;;  %v167_v10 = vmul.f32 %v2974_v4, %v32_v57 }
  0x10   :  { %v428_v9 = vmax.f32 %v300_v61, 0.0  ;;  %v364_v12 = vadd.f32 %v2979_v5, %v229_v1  ;;  %v365_v13 = vadd.f32 %v2979_v5, %v230_v2  ;;  %v168_v14 = vmul.f32 %v2974_v4, %v33_v62  ;;  %v102_v61 = vld [vmem:[%s4478_s0 + $0x270] sm:$0xff]  ;;  %v103_v62 = vld [vmem:[%s4478_s0 + $0x278] sm:$0xff] }
  0x11   :  { %v429_v11 = vmax.f32 %v301_v0, 0.0  ;;  %2795 = vmatprep.mubr.msk.bf16.mxu0 %vm615_vm1, %v552_v7  ;;  %v584_v16 = vpack.c.bf16 %v491_v8, %v490_v63  ;;  %v302_v17 = vadd.f32 %v2979_v5, %v167_v10  ;;  %v231_v18 = vmul.f32 %v2974_v4, %v96_v3  ;;  %v40_v3 = vld [vmem:[%s4478_s0 + $0x80] sm:$0xff]  ;;  %v41_v10 = vld [vmem:[%s4478_s0 + $0x88] sm:$0xff] }
  0x12   :  { %v232_v19 = vmul.f32 %v2974_v4, %v97_v6  ;;  %v492_v23 = vmax.f32 %v364_v12, 0.0  ;;  %v493_v24 = vmax.f32 %v365_v13, 0.0  ;;  %v303_v25 = vadd.f32 %v2979_v5, %v168_v14 }
  0x13   :  { %v553_v22 = vpack.c.bf16 %v429_v11, %v428_v9  ;;  %2859 = vmatprep.mubr.msk.bf16.mxu1 %vm615_vm1, %v584_v16  ;;  %v430_v27 = vmax.f32 %v302_v17, 0.0  ;;  %v366_v28 = vadd.f32 %v2979_v5, %v231_v18  ;;  %v169_v30 = vmul.f32 %v2974_v4, %v34_v15  ;;  %v104_v15 = vld [vmem:[%s4478_s0 + $0x280] sm:$0xff]  ;;  %v105_v16 = vld [vmem:[%s4478_s0 + $0x288] sm:$0xff] }
  0x14   :  { %v367_v29 = vadd.f32 %v2979_v5, %v232_v19  ;;  %v585_v32 = vpack.c.bf16 %v493_v24, %v492_v23  ;;  %v431_v33 = vmax.f32 %v303_v25, 0.0  ;;  %v170_v34 = vmul.f32 %v2974_v4, %v35_v20  ;;  %v42_v25 = vld [vmem:[%s4478_s0 + $0x90] sm:$0xff] }
  0x15   :  { %2796 = vmatmul.mubr.msk.bf16.gmra.mrb[4].mxu0 %vm615_vm1, %v553_v22  ;;  %v233_v35 = vmul.f32 %v2974_v4, %v98_v21  ;;  %v494_v37 = vmax.f32 %v366_v28, 0.0  ;;  %v304_v39 = vadd.f32 %v2979_v5, %v169_v30  ;;  %v234_v40 = vmul.f32 %v2974_v4, %v99_v26  ;;  %v43_v30 = vld [vmem:[%s4478_s0 + $0x98] sm:$0xff] }
  0x16   :  { %v495_v38 = vmax.f32 %v367_v29, 0.0  ;;  %v554_v42 = vpack.c.bf16 %v431_v33, %v430_v27  ;;  %v305_v43 = vadd.f32 %v2979_v5, %v170_v34  ;;  %v171_v45 = vmul.f32 %v2974_v4, %v36_v31  ;;  %v106_v31 = vld [vmem:[%s4478_s0 + $0x290] sm:$0xff] }
  0x17   :  { %2860 = vmatmul.mubr.msk.bf16.gmra.mrb[4].mxu1 %vm615_vm1, %v585_v32  ;;  %v368_v44 = vadd.f32 %v2979_v5, %v233_v35  ;;  %v432_v49 = vmax.f32 %v304_v39, 0.0  ;;  %v369_v50 = vadd.f32 %v2979_v5, %v234_v40  ;;  %v172_v51 = vmul.f32 %v2974_v4, %v37_v36  ;;  %v107_v36 = vld [vmem:[%s4478_s0 + $0x298] sm:$0xff] }
  0x18   :  { %v586_v48 = vpack.c.bf16 %v495_v38, %v494_v37  ;;  %2799 = vmatprep.mubr.msk.bf16.mxu0 %vm615_vm1, %v554_v42  ;;  %v433_v53 = vmax.f32 %v305_v43, 0.0  ;;  %v306_v55 = vadd.f32 %v2979_v5, %v171_v45  ;;  %v235_v56 = vmul.f32 %v2974_v4, %v100_v41  ;;  %v44_v41 = vld [vmem:[%s4478_s0 + $0xa0] sm:$0xff] }
  0x19   :  { %v496_v54 = vmax.f32 %v368_v44, 0.0  ;;  %v497_v57 = vmax.f32 %v369_v50, 0.0  ;;  %v307_v58 = vadd.f32 %v2979_v5, %v172_v51  ;;  %v236_v59 = vmul.f32 %v2974_v4, %v101_v46  ;;  %v45_v46 = vld [vmem:[%s4478_s0 + $0xa8] sm:$0xff]  ;;  %v108_v51 = vld [vmem:[%s4478_s0 + $0x2a0] sm:$0xff] }
  0x1a   :  { %2863 = vmatprep.mubr.msk.bf16.mxu1 %vm615_vm1, %v586_v48  ;;  %v173_v60 = vmul.f32 %v2974_v4, %v38_v47  ;;  %v555_v63 = vpack.c.bf16 %v433_v53, %v432_v49  ;;  %v434_v0 = vmax.f32 %v306_v55, 0.0  ;;  %v370_v1 = vadd.f32 %v2979_v5, %v235_v56  ;;  %v109_v56 = vld [vmem:[%s4478_s0 + $0x2a8] sm:$0xff] }
  0x1b   :  { %v174_v2 = vmul.f32 %v2974_v4, %v39_v52  ;;  %v587_v6 = vpack.c.bf16 %v497_v57, %v496_v54  ;;  %v435_v7 = vmax.f32 %v307_v58, 0.0  ;;  %v371_v8 = vadd.f32 %v2979_v5, %v236_v59  ;;  %v46_v57 = vld [vmem:[%s4478_s0 + $0xb0] sm:$0xff] }
  0x1c   :  { %v308_v9 = vadd.f32 %v2979_v5, %v173_v60  ;;  %v498_v11 = vmax.f32 %v370_v1, 0.0  ;;  %v237_v13 = vmul.f32 %v2974_v4, %v102_v61  ;;  %v238_v14 = vmul.f32 %v2974_v4, %v103_v62  ;;  %v47_v62 = vld [vmem:[%s4478_s0 + $0xb8] sm:$0xff] }
  0x1d   :  { %2800 = vmatmul.mubr.msk.bf16.gmra.mrb[8].mxu0 %vm615_vm1, %v555_v63  ;;  %v309_v12 = vadd.f32 %v2979_v5, %v174_v2  ;;  %v556_v17 = vpack.c.bf16 %v435_v7, %v434_v0  ;;  %v499_v18 = vmax.f32 %v371_v8, 0.0  ;;  %v175_v20 = vmul.f32 %v2974_v4, %v40_v3 }
  0x1e   :  { %v436_v19 = vmax.f32 %v308_v9, 0.0  ;;  %v372_v22 = vadd.f32 %v2979_v5, %v237_v13  ;;  %v373_v23 = vadd.f32 %v2979_v5, %v238_v14  ;;  %v176_v24 = vmul.f32 %v2974_v4, %v41_v10  ;;  %v110_v9 = vld [vmem:[%s4478_s0 + $0x2b0] sm:$0xff]  ;;  %v111_v10 = vld [vmem:[%s4478_s0 + $0x2b8] sm:$0xff] }
  0x1f   :  { %2864 = vmatmul.mubr.msk.bf16.gmra.mrb[8].mxu1 %vm615_vm1, %v587_v6  ;;  %v437_v21 = vmax.f32 %v309_v12, 0.0  ;;  %2803 = vmatprep.mubr.msk.bf16.mxu0 %vm615_vm1, %v556_v17  ;;  %v588_v26 = vpack.c.bf16 %v499_v18, %v498_v11  ;;  %v310_v27 = vadd.f32 %v2979_v5, %v175_v20  ;;  %v239_v28 = vmul.f32 %v2974_v4, %v104_v15  ;;  %v48_v15 = vld [vmem:[%s4478_s0 + $0xc0] sm:$0xff]  ;;  %v49_v20 = vld [vmem:[%s4478_s0 + $0xc8] sm:$0xff] }
  0x20   :  { %v240_v29 = vmul.f32 %v2974_v4, %v105_v16  ;;  %v500_v33 = vmax.f32 %v372_v22, 0.0  ;;  %v501_v34 = vmax.f32 %v373_v23, 0.0  ;;  %v311_v35 = vadd.f32 %v2979_v5, %v176_v24 }
  0x21   :  { %v557_v32 = vpack.c.bf16 %v437_v21, %v436_v19  ;;  %2867 = vmatprep.mubr.msk.bf16.mxu1 %vm615_vm1, %v588_v26  ;;  %v438_v37 = vmax.f32 %v310_v27, 0.0  ;;  %v374_v38 = vadd.f32 %v2979_v5, %v239_v28  ;;  %v177_v40 = vmul.f32 %v2974_v4, %v42_v25  ;;  %v112_v25 = vld [vmem:[%s4478_s0 + $0x2c0] sm:$0xff]  ;;  %v113_v26 = vld [vmem:[%s4478_s0 + $0x2c8] sm:$0xff] }
  0x22   :  { %v375_v39 = vadd.f32 %v2979_v5, %v240_v29  ;;  %v589_v42 = vpack.c.bf16 %v501_v34, %v500_v33  ;;  %v439_v43 = vmax.f32 %v311_v35, 0.0  ;;  %v178_v44 = vmul.f32 %v2974_v4, %v43_v30  ;;  %v50_v35 = vld [vmem:[%s4478_s0 + $0xd0] sm:$0xff] }
  0x23   :  { %v241_v45 = vmul.f32 %v2974_v4, %v106_v31  ;;  %v502_v47 = vmax.f32 %v374_v38, 0.0  ;;  %v312_v49 = vadd.f32 %v2979_v5, %v177_v40  ;;  %v242_v50 = vmul.f32 %v2974_v4, %v107_v36  ;;  %v51_v40 = vld [vmem:[%s4478_s0 + $0xd8] sm:$0xff] }
  0x24   :  { %v503_v48 = vmax.f32 %v375_v39, 0.0  ;;  %v558_v52 = vpack.c.bf16 %v439_v43, %v438_v37  ;;  %v313_v53 = vadd.f32 %v2979_v5, %v178_v44  ;;  %v179_v55 = vmul.f32 %v2974_v4, %v44_v41  ;;  %v114_v41 = vld [vmem:[%s4478_s0 + $0x2d0] sm:$0xff] }
  0x25   :  { %2804 = vmatmul.mubr.msk.bf16.gmra.mrb[12].mxu0 %vm615_vm1, %v557_v32  ;;  %v376_v54 = vadd.f32 %v2979_v5, %v241_v45  ;;  %v440_v59 = vmax.f32 %v312_v49, 0.0  ;;  %v377_v60 = vadd.f32 %v2979_v5, %v242_v50  ;;  %v180_v61 = vmul.f32 %v2974_v4, %v45_v46  ;;  %v115_v46 = vld [vmem:[%s4478_s0 + $0x2d8] sm:$0xff] }
  0x26   :  { %v590_v58 = vpack.c.bf16 %v503_v48, %v502_v47  ;;  %2807 = vmatprep.mubr.msk.bf16.mxu0 %vm615_vm1, %v558_v52  ;;  %v441_v63 = vmax.f32 %v313_v53, 0.0  ;;  %v314_v1 = vadd.f32 %v2979_v5, %v179_v55  ;;  %v243_v2 = vmul.f32 %v2974_v4, %v108_v51  ;;  %v52_v51 = vld [vmem:[%s4478_s0 + $0xe0] sm:$0xff] }
  0x27   :  { %2868 = vmatmul.mubr.msk.bf16.gmra.mrb[12].mxu1 %vm615_vm1, %v589_v42  ;;  %v504_v0 = vmax.f32 %v376_v54, 0.0  ;;  %v505_v3 = vmax.f32 %v377_v60, 0.0  ;;  %v315_v6 = vadd.f32 %v2979_v5, %v180_v61  ;;  %v244_v7 = vmul.f32 %v2974_v4, %v109_v56  ;;  %v53_v56 = vld [vmem:[%s4478_s0 + $0xe8] sm:$0xff]  ;;  %v116_v61 = vld [vmem:[%s4478_s0 + $0x2e0] sm:$0xff] }
  0x28   :  { %2871 = vmatprep.mubr.msk.bf16.mxu1 %vm615_vm1, %v590_v58  ;;  %v181_v8 = vmul.f32 %v2974_v4, %v46_v57  ;;  %v559_v11 = vpack.c.bf16 %v441_v63, %v440_v59  ;;  %v442_v12 = vmax.f32 %v314_v1, 0.0  ;;  %v378_v13 = vadd.f32 %v2979_v5, %v243_v2  ;;  %v117_v2 = vld [vmem:[%s4478_s0 + $0x2e8] sm:$0xff] }
  0x29   :  { %v182_v14 = vmul.f32 %v2974_v4, %v47_v62  ;;  %v591_v16 = vpack.c.bf16 %v505_v3, %v504_v0  ;;  %v443_v17 = vmax.f32 %v315_v6, 0.0  ;;  %v379_v18 = vadd.f32 %v2979_v5, %v244_v7  ;;  %v54_v3 = vld [vmem:[%s4478_s0 + $0xf0] sm:$0xff] }
  0x2a   :  { %v316_v19 = vadd.f32 %v2979_v5, %v181_v8  ;;  %v506_v21 = vmax.f32 %v378_v13, 0.0  ;;  %v245_v23 = vmul.f32 %v2974_v4, %v110_v9  ;;  %v246_v24 = vmul.f32 %v2974_v4, %v111_v10  ;;  %v55_v10 = vld [vmem:[%s4478_s0 + $0xf8] sm:$0xff] }
  0x2b   :  { %v317_v22 = vadd.f32 %v2979_v5, %v182_v14  ;;  %v560_v27 = vpack.c.bf16 %v443_v17, %v442_v12  ;;  %v507_v28 = vmax.f32 %v379_v18, 0.0  ;;  %v183_v30 = vmul.f32 %v2974_v4, %v48_v15 }
  0x2c   :  { %v444_v29 = vmax.f32 %v316_v19, 0.0  ;;  %v380_v32 = vadd.f32 %v2979_v5, %v245_v23  ;;  %v381_v33 = vadd.f32 %v2979_v5, %v246_v24  ;;  %v184_v34 = vmul.f32 %v2974_v4, %v49_v20  ;;  %v118_v19 = vld [vmem:[%s4478_s0 + $0x2f0] sm:$0xff]  ;;  %v119_v20 = vld [vmem:[%s4478_s0 + $0x2f8] sm:$0xff]  ;;  %v56_v24 = vld [vmem:[%s4478_s0 + $0x100] sm:$0xff] }
  0x2d   :  { %2808 = vmatmul.mubr.msk.bf16.gmra.mrb[16].mxu0 %vm615_vm1, %v559_v11  ;;  %v445_v31 = vmax.f32 %v317_v22, 0.0  ;;  %v592_v36 = vpack.c.bf16 %v507_v28, %v506_v21  ;;  %v318_v37 = vadd.f32 %v2979_v5, %v183_v30  ;;  %v247_v38 = vmul.f32 %v2974_v4, %v112_v25 }
  0x2e   :  { %2811 = vmatprep.mubr.msk.bf16.mxu0 %vm615_vm1, %v560_v27  ;;  %v248_v39 = vmul.f32 %v2974_v4, %v113_v26  ;;  %v508_v43 = vmax.f32 %v380_v32, 0.0  ;;  %v509_v44 = vmax.f32 %v381_v33, 0.0  ;;  %v319_v45 = vadd.f32 %v2979_v5, %v184_v34  ;;  %v120_v34 = vld [vmem:[%s4478_s0 + $0x300] sm:$0xff] }
  0x2f   :  { %2872 = vmatmul.mubr.msk.bf16.gmra.mrb[16].mxu1 %vm615_vm1, %v591_v16  ;;  %v561_v42 = vpack.c.bf16 %v445_v31, %v444_v29  ;;  %v446_v47 = vmax.f32 %v318_v37, 0.0  ;;  %v382_v48 = vadd.f32 %v2979_v5, %v247_v38  ;;  %v185_v50 = vmul.f32 %v2974_v4, %v50_v35  ;;  %v57_v29 = vld [vmem:[%s4478_s0 + $0x108] sm:$0xff] }
  0x30   :  { %2875 = vmatprep.mubr.msk.bf16.mxu1 %vm615_vm1, %v592_v36  ;;  %v383_v49 = vadd.f32 %v2979_v5, %v248_v39  ;;  %v593_v52 = vpack.c.bf16 %v509_v44, %v508_v43  ;;  %v447_v53 = vmax.f32 %v319_v45, 0.0  ;;  %v186_v54 = vmul.f32 %v2974_v4, %v51_v40  ;;  %v121_v35 = vld [vmem:[%s4478_s0 + $0x308] sm:$0xff]  ;;  %v58_v44 = vld [vmem:[%s4478_s0 + $0x110] sm:$0xff] }
  0x31   :  { %v249_v55 = vmul.f32 %v2974_v4, %v114_v41  ;;  %v510_v57 = vmax.f32 %v382_v48, 0.0  ;;  %v320_v59 = vadd.f32 %v2979_v5, %v185_v50  ;;  %v250_v60 = vmul.f32 %v2974_v4, %v115_v46  ;;  %v122_v50 = vld [vmem:[%s4478_s0 + $0x310] sm:$0xff] }
  0x32   :  { %v511_v58 = vmax.f32 %v383_v49, 0.0  ;;  %v562_v62 = vpack.c.bf16 %v447_v53, %v446_v47  ;;  %v321_v63 = vadd.f32 %v2979_v5, %v186_v54  ;;  %v187_v1 = vmul.f32 %v2974_v4, %v52_v51  ;;  %v59_v49 = vld [vmem:[%s4478_s0 + $0x118] sm:$0xff] }
  0x33   :  { %v384_v0 = vadd.f32 %v2979_v5, %v249_v55  ;;  %v448_v7 = vmax.f32 %v320_v59, 0.0  ;;  %v385_v8 = vadd.f32 %v2979_v5, %v250_v60  ;;  %v188_v9 = vmul.f32 %v2974_v4, %v53_v56  ;;  %v123_v55 = vld [vmem:[%s4478_s0 + $0x318] sm:$0xff]  ;;  %v60_v60 = vld [vmem:[%s4478_s0 + $0x120] sm:$0xff] }
  0x34   :  { %v594_v6 = vpack.c.bf16 %v511_v58, %v510_v57  ;;  %v449_v11 = vmax.f32 %v321_v63, 0.0  ;;  %v322_v13 = vadd.f32 %v2979_v5, %v187_v1  ;;  %v251_v14 = vmul.f32 %v2974_v4, %v116_v61 }
  0x35   :  { %2812 = vmatmul.mubr.msk.bf16.gmra.mrb[20].mxu0 %vm615_vm1, %v561_v42  ;;  %v512_v12 = vmax.f32 %v384_v0, 0.0  ;;  %v513_v15 = vmax.f32 %v385_v8, 0.0  ;;  %v323_v16 = vadd.f32 %v2979_v5, %v188_v9  ;;  %v252_v17 = vmul.f32 %v2974_v4, %v117_v2  ;;  %v61_v0 = vld [vmem:[%s4478_s0 + $0x128] sm:$0xff] }
  0x36   :  { %2815 = vmatprep.mubr.msk.bf16.mxu0 %vm615_vm1, %v562_v62  ;;  %v189_v18 = vmul.f32 %v2974_v4, %v54_v3  ;;  %v450_v21 = vmax.f32 %v322_v13, 0.0  ;;  %v386_v22 = vadd.f32 %v2979_v5, %v251_v14  ;;  %v190_v23 = vmul.f32 %v2974_v4, %v55_v10  ;;  %v62_v13 = vld [vmem:[%s4478_s0 + $0x130] sm:$0xff] }
  0x37   :  { %2876 = vmatmul.mubr.msk.bf16.gmra.mrb[20].mxu1 %vm615_vm1, %v593_v52  ;;  %v563_v25 = vpack.c.bf16 %v449_v11, %v448_v7  ;;  %v451_v26 = vmax.f32 %v323_v16, 0.0  ;;  %v387_v27 = vadd.f32 %v2979_v5, %v252_v17  ;;  %v253_v32 = vmul.f32 %v2974_v4, %v118_v19  ;;  %v124_v7 = vld [vmem:[%s4478_s0 + $0x320] sm:$0xff] }
  0x38   :  { %2879 = vmatprep.mubr.msk.bf16.mxu1 %vm615_vm1, %v594_v6  ;;  %v324_v28 = vadd.f32 %v2979_v5, %v189_v18  ;;  %v514_v30 = vmax.f32 %v386_v22, 0.0  ;;  %v325_v31 = vadd.f32 %v2979_v5, %v190_v23  ;;  %v254_v33 = vmul.f32 %v2974_v4, %v119_v20  ;;  %v63_v18 = vld [vmem:[%s4478_s0 + $0x138] sm:$0xff] }
  0x39   :  { %v595_v36 = vpack.c.bf16 %v513_v15, %v512_v12  ;;  %v564_v37 = vpack.c.bf16 %v451_v26, %v450_v21  ;;  %v515_v38 = vmax.f32 %v387_v27, 0.0  ;;  %v191_v39 = vmul.f32 %v2974_v4, %v56_v24  ;;  %v125_v12 = vld [vmem:[%s4478_s0 + $0x328] sm:$0xff]  ;;  %v126_v27 = vld [vmem:[%s4478_s0 + $0x330] sm:$0xff] }
  0x3a   :  { %v452_v40 = vmax.f32 %v324_v28, 0.0  ;;  %v388_v41 = vadd.f32 %v2979_v5, %v253_v32  ;;  %v389_v42 = vadd.f32 %v2979_v5, %v254_v33  ;;  %v192_v43 = vmul.f32 %v2974_v4, %v57_v29  ;;  %v127_v28 = vld [vmem:[%s4478_s0 + $0x338] sm:$0xff]  ;;  %v64_v33 = vld [vmem:[%s4478_s0 + $0x140] sm:$0xff] }
  0x3b   :  { %v596_v45 = vpack.c.bf16 %v515_v38, %v514_v30  ;;  %v326_v46 = vadd.f32 %v2979_v5, %v191_v39  ;;  %v255_v47 = vmul.f32 %v2974_v4, %v120_v34  ;;  %v256_v48 = vmul.f32 %v2974_v4, %v121_v35 }
  0x3c   :  { %v453_v51 = vmax.f32 %v325_v31, 0.0  ;;  %v516_v52 = vmax.f32 %v388_v41, 0.0  ;;  %v517_v53 = vmax.f32 %v389_v42, 0.0  ;;  %v327_v54 = vadd.f32 %v2979_v5, %v192_v43  ;;  %v128_v41 = vld [vmem:[%s4478_s0 + $0x340] sm:$0xff]  ;;  %v129_v42 = vld [vmem:[%s4478_s0 + $0x348] sm:$0xff] }
  0x3d   :  { %2816 = vmatmul.mubr.msk.bf16.gmra.mrb[24].mxu0 %vm615_vm1, %v563_v25  ;;  %v454_v56 = vmax.f32 %v326_v46, 0.0  ;;  %v390_v57 = vadd.f32 %v2979_v5, %v255_v47  ;;  %v391_v58 = vadd.f32 %v2979_v5, %v256_v48  ;;  %v193_v59 = vmul.f32 %v2974_v4, %v58_v44 }
  0x3e   :  { %2819 = vmatprep.mubr.msk.bf16.mxu0 %vm615_vm1, %v564_v37  ;;  %v455_v61 = vmax.f32 %v327_v54, 0.0  ;;  %v194_v62 = vmul.f32 %v2974_v4, %v59_v49  ;;  %v257_v63 = vmul.f32 %v2974_v4, %v122_v50  ;;  %v258_v6 = vmul.f32 %v2974_v4, %v123_v55  ;;  %v65_v37 = vld [vmem:[%s4478_s0 + $0x148] sm:$0xff]  ;;  %v66_v54 = vld [vmem:[%s4478_s0 + $0x150] sm:$0xff]  ;;  %v67_v55 = vld [vmem:[%s4478_s0 + $0x158] sm:$0xff] }
  0x3f   :  { %2880 = vmatmul.mubr.msk.bf16.gmra.mrb[24].mxu1 %vm615_vm1, %v595_v36  ;;  %v518_v1 = vmax.f32 %v390_v57, 0.0  ;;  %v519_v2 = vmax.f32 %v391_v58, 0.0  ;;  %v328_v3 = vadd.f32 %v2979_v5, %v193_v59  ;;  %v565_v8 = vpack.c.bf16 %v453_v51, %v452_v40 }
  0x40   :  { %2883 = vmatprep.mubr.msk.bf16.mxu1 %vm615_vm1, %v596_v45  ;;  %v329_v9 = vadd.f32 %v2979_v5, %v194_v62  ;;  %v392_v10 = vadd.f32 %v2979_v5, %v257_v63  ;;  %v195_v11 = vmul.f32 %v2974_v4, %v60_v60  ;;  %v597_v14 = vpack.c.bf16 %v517_v53, %v516_v52  ;;  %v130_v60 = vld [vmem:[%s4478_s0 + $0x350] sm:$0xff] }
  0x41   :  { %v566_v15 = vpack.c.bf16 %v455_v61, %v454_v56  ;;  %v393_v16 = vadd.f32 %v2979_v5, %v258_v6  ;;  %v196_v17 = vmul.f32 %v2974_v4, %v61_v0  ;;  %v598_v19 = vpack.c.bf16 %v519_v2, %v518_v1  ;;  %v131_v1 = vld [vmem:[%s4478_s0 + $0x358] sm:$0xff]  ;;  %v68_v2 = vld [vmem:[%s4478_s0 + $0x160] sm:$0xff] }
  0x42   :  { %v456_v20 = vmax.f32 %v328_v3, 0.0  ;;  %v330_v21 = vadd.f32 %v2979_v5, %v195_v11  ;;  %v259_v22 = vmul.f32 %v2974_v4, %v124_v7  ;;  %v457_v23 = vmax.f32 %v329_v9, 0.0  ;;  %v69_v9 = vld [vmem:[%s4478_s0 + $0x168] sm:$0xff]  ;;  %v132_v11 = vld [vmem:[%s4478_s0 + $0x360] sm:$0xff] }
  0x43   :  { %v331_v24 = vadd.f32 %v2979_v5, %v196_v17  ;;  %v260_v25 = vmul.f32 %v2974_v4, %v125_v12  ;;  %v197_v26 = vmul.f32 %v2974_v4, %v62_v13  ;;  %v520_v29 = vmax.f32 %v392_v10, 0.0 }
  0x44   :  { %v521_v30 = vmax.f32 %v393_v16, 0.0  ;;  %v394_v31 = vadd.f32 %v2979_v5, %v259_v22  ;;  %v198_v32 = vmul.f32 %v2974_v4, %v63_v18  ;;  %v458_v34 = vmax.f32 %v330_v21, 0.0  ;;  %v133_v16 = vld [vmem:[%s4478_s0 + $0x368] sm:$0xff] }
  0x45   :  { %2820 = vmatmul.mubr.msk.bf16.gmra.mrb[28].mxu0 %vm615_vm1, %v565_v8  ;;  %v459_v35 = vmax.f32 %v331_v24, 0.0  ;;  %v395_v36 = vadd.f32 %v2979_v5, %v260_v25  ;;  %v332_v38 = vadd.f32 %v2979_v5, %v197_v26  ;;  %v261_v39 = vmul.f32 %v2974_v4, %v126_v27 }
  0x46   :  { %2823 = vmatprep.mubr.msk.bf16.mxu0 %vm615_vm1, %v566_v15  ;;  %v262_v40 = vmul.f32 %v2974_v4, %v127_v28  ;;  %v522_v43 = vmax.f32 %v394_v31, 0.0  ;;  %v333_v45 = vadd.f32 %v2979_v5, %v198_v32  ;;  %v199_v46 = vmul.f32 %v2974_v4, %v64_v33  ;;  %v72_v33 = vld [vmem:[%s4478_s0 + $0x180] sm:$0xff] }
  0x47   :  { %2884 = vmatmul.mubr.msk.bf16.gmra.mrb[28].mxu1 %vm615_vm1, %v597_v14  ;;  %v523_v44 = vmax.f32 %v395_v36, 0.0  ;;  %v567_v47 = vpack.c.bf16 %v457_v23, %v456_v20  ;;  %v599_v48 = vpack.c.bf16 %v521_v30, %v520_v29  ;;  %v200_v49 = vmul.f32 %v2974_v4, %v65_v37  ;;  %v70_v29 = vld [vmem:[%s4478_s0 + $0x170] sm:$0xff]  ;;  %v71_v30 = vld [vmem:[%s4478_s0 + $0x178] sm:$0xff] }
  0x48   :  { %2887 = vmatprep.mubr.msk.bf16.mxu1 %vm615_vm1, %v598_v19  ;;  %v568_v50 = vpack.c.bf16 %v459_v35, %v458_v34  ;;  %v334_v51 = vadd.f32 %v2979_v5, %v199_v46  ;;  %v263_v52 = vmul.f32 %v2974_v4, %v128_v41  ;;  %v264_v53 = vmul.f32 %v2974_v4, %v129_v42  ;;  %v134_v37 = vld [vmem:[%s4478_s0 + $0x370] sm:$0xff] }
  0x49   :  { %v460_v56 = vmax.f32 %v332_v38, 0.0  ;;  %v396_v57 = vadd.f32 %v2979_v5, %v261_v39  ;;  %v397_v58 = vadd.f32 %v2979_v5, %v262_v40  ;;  %v335_v59 = vadd.f32 %v2979_v5, %v200_v49  ;;  %v135_v38 = vld [vmem:[%s4478_s0 + $0x378] sm:$0xff]  ;;  %v73_v39 = vld [vmem:[%s4478_s0 + $0x188] sm:$0xff] }
  0x4a   :  { %v600_v61 = vpack.c.bf16 %v523_v44, %v522_v43  ;;  %v461_v62 = vmax.f32 %v333_v45, 0.0  ;;  %v398_v63 = vadd.f32 %v2979_v5, %v263_v52  ;;  %v399_v0 = vadd.f32 %v2979_v5, %v264_v53  ;;  %v136_v44 = vld [vmem:[%s4478_s0 + $0x380] sm:$0xff]  ;;  %v137_v45 = vld [vmem:[%s4478_s0 + $0x388] sm:$0xff] }
  0x4b   :  { %v462_v3 = vmax.f32 %v334_v51, 0.0  ;;  %v463_v6 = vmax.f32 %v335_v59, 0.0  ;;  %v201_v7 = vmul.f32 %v2974_v4, %v66_v54  ;;  %v202_v8 = vmul.f32 %v2974_v4, %v67_v55 }
  0x4c   :  { %v265_v10 = vmul.f32 %v2974_v4, %v130_v60  ;;  %v524_v12 = vmax.f32 %v396_v57, 0.0  ;;  %v525_v13 = vmax.f32 %v397_v58, 0.0  ;;  %v266_v14 = vmul.f32 %v2974_v4, %v131_v1  ;;  %v75_v1 = vld [vmem:[%s4478_s0 + $0x198] sm:$0xff] }
  0x4d   :  { %2824 = vmatmul.mubr.msk.bf16.gmra.mrb[32].mxu0 %vm615_vm1, %v567_v47  ;;  %v203_v15 = vmul.f32 %v2974_v4, %v68_v2  ;;  %v569_v17 = vpack.c.bf16 %v461_v62, %v460_v56  ;;  %v526_v18 = vmax.f32 %v398_v63, 0.0  ;;  %v527_v19 = vmax.f32 %v399_v0, 0.0  ;;  %v74_v0 = vld [vmem:[%s4478_s0 + $0x190] sm:$0xff] }
  0x4e   :  { %2827 = vmatprep.mubr.msk.bf16.mxu0 %vm615_vm1, %v568_v50  ;;  %v204_v20 = vmul.f32 %v2974_v4, %v69_v9  ;;  %v570_v21 = vpack.c.bf16 %v463_v6, %v462_v3  ;;  %v336_v22 = vadd.f32 %v2979_v5, %v201_v7  ;;  %v337_v23 = vadd.f32 %v2979_v5, %v202_v8  ;;  %v76_v7 = vld [vmem:[%s4478_s0 + $0x1a0] sm:$0xff]  ;;  %v77_v8 = vld [vmem:[%s4478_s0 + $0x1a8] sm:$0xff] }
  0x4f   :  { %2888 = vmatmul.mubr.msk.bf16.gmra.mrb[32].mxu1 %vm615_vm1, %v599_v48  ;;  %v267_v24 = vmul.f32 %v2974_v4, %v132_v11  ;;  %v400_v25 = vadd.f32 %v2979_v5, %v265_v10  ;;  %v338_v26 = vadd.f32 %v2979_v5, %v203_v15  ;;  %v268_v28 = vmul.f32 %v2974_v4, %v133_v16 }
  0x50   :  { %2891 = vmatprep.mubr.msk.bf16.mxu1 %vm615_vm1, %v600_v61  ;;  %v339_v27 = vadd.f32 %v2979_v5, %v204_v20  ;;  %v601_v31 = vpack.c.bf16 %v525_v13, %v524_v12  ;;  %v401_v32 = vadd.f32 %v2979_v5, %v266_v14  ;;  %v602_v34 = vpack.c.bf16 %v527_v19, %v526_v18  ;;  %v138_v12 = vld [vmem:[%s4478_s0 + $0x390] sm:$0xff]  ;;  %v139_v13 = vld [vmem:[%s4478_s0 + $0x398] sm:$0xff]  ;;  %v140_v18 = vld [vmem:[%s4478_s0 + $0x3a0] sm:$0xff] }
  0x51   :  { %v402_v35 = vadd.f32 %v2979_v5, %v267_v24  ;;  %v403_v36 = vadd.f32 %v2979_v5, %v268_v28  ;;  %v464_v40 = vmax.f32 %v336_v22, 0.0  ;;  %v465_v41 = vmax.f32 %v337_v23, 0.0  ;;  %v141_v19 = vld [vmem:[%s4478_s0 + $0x3a8] sm:$0xff] }
  0x52   :  { %v205_v42 = vmul.f32 %v2974_v4, %v70_v29  ;;  %v206_v43 = vmul.f32 %v2974_v4, %v71_v30  ;;  %v528_v46 = vmax.f32 %v400_v25, 0.0  ;;  %v466_v47 = vmax.f32 %v338_v26, 0.0 }
  0x53   :  { %v467_v48 = vmax.f32 %v339_v27, 0.0  ;;  %v207_v49 = vmul.f32 %v2974_v4, %v72_v33  ;;  %v529_v50 = vmax.f32 %v401_v32, 0.0  ;;  %v269_v51 = vmul.f32 %v2974_v4, %v134_v37 }
  0x54   :  { %v270_v52 = vmul.f32 %v2974_v4, %v135_v38  ;;  %v208_v53 = vmul.f32 %v2974_v4, %v73_v39  ;;  %v530_v54 = vmax.f32 %v402_v35, 0.0  ;;  %v531_v55 = vmax.f32 %v403_v36, 0.0  ;;  %v78_v39 = vld [vmem:[%s4478_s0 + $0x1b0] sm:$0xff] }
  0x55   :  { %2828 = vmatmul.mubr.msk.bf16.gmra.mrb[36].mxu0 %vm615_vm1, %v569_v17  ;;  %v271_v56 = vmul.f32 %v2974_v4, %v136_v44  ;;  %v272_v57 = vmul.f32 %v2974_v4, %v137_v45  ;;  %v571_v58 = vpack.c.bf16 %v465_v41, %v464_v40  ;;  %v340_v59 = vadd.f32 %v2979_v5, %v205_v42  ;;  %v80_v42 = vld [vmem:[%s4478_s0 + $0x1c0] sm:$0xff] }
  0x56   :  { %2831 = vmatprep.mubr.msk.bf16.mxu0 %vm615_vm1, %v570_v21  ;;  %v341_v60 = vadd.f32 %v2979_v5, %v206_v43  ;;  %v572_v61 = vpack.c.bf16 %v467_v48, %v466_v47  ;;  %v342_v62 = vadd.f32 %v2979_v5, %v207_v49  ;;  %v343_v63 = vadd.f32 %v2979_v5, %v208_v53  ;;  %v81_v43 = vld [vmem:[%s4478_s0 + $0x1c8] sm:$0xff]  ;;  %v142_v47 = vld [vmem:[%s4478_s0 + $0x3b0] sm:$0xff]  ;;  %v143_v48 = vld [vmem:[%s4478_s0 + $0x3b8] sm:$0xff] }
  0x57   :  { %2892 = vmatmul.mubr.msk.bf16.gmra.mrb[36].mxu1 %vm615_vm1, %v601_v31  ;;  %v603_v2 = vpack.c.bf16 %v529_v50, %v528_v46  ;;  %v404_v3 = vadd.f32 %v2979_v5, %v269_v51  ;;  %v405_v6 = vadd.f32 %v2979_v5, %v270_v52  ;;  %v604_v9 = vpack.c.bf16 %v531_v55, %v530_v54  ;;  %v3588_v51 = vld [vmem:[%s4479_s1] ss:$0 sm:$0xff]  ;;  %v145_v55 = vld [vmem:[%s4478_s0 + $0x3c8] sm:$0xff] }
  0x58   :  { %2895 = vmatprep.mubr.msk.bf16.mxu1 %vm615_vm1, %v602_v34  ;;  %v406_v10 = vadd.f32 %v2979_v5, %v271_v56  ;;  %v407_v11 = vadd.f32 %v2979_v5, %v272_v57  ;;  %v468_v14 = vmax.f32 %v340_v59, 0.0  ;;  %v469_v15 = vmax.f32 %v341_v60, 0.0  ;;  %v3557_v34 = vld [vmem:[%s4480_s2] ss:$0 sm:$0xff] }
  0x59   :  { %v209_v16 = vmul.f32 %v2974_v4, %v74_v0  ;;  %v210_v17 = vmul.f32 %v2974_v4, %v75_v1  ;;  %v470_v20 = vmax.f32 %v342_v62, 0.0  ;;  %v471_v21 = vmax.f32 %v343_v63, 0.0  ;;  %v144_v54 = vld [vmem:[%s4478_s0 + $0x3c0] sm:$0xff] }
  0x5a   :  { %v211_v22 = vmul.f32 %v2974_v4, %v76_v7  ;;  %v212_v23 = vmul.f32 %v2974_v4, %v77_v8  ;;  %v532_v24 = vmax.f32 %v404_v3, 0.0  ;;  %v533_v25 = vmax.f32 %v405_v6, 0.0 }
  0x5b   :  { %v273_v26 = vmul.f32 %v2974_v4, %v138_v12  ;;  %v274_v27 = vmul.f32 %v2974_v4, %v139_v13  ;;  %v534_v28 = vmax.f32 %v406_v10, 0.0  ;;  %v535_v29 = vmax.f32 %v407_v11, 0.0  ;;  %v82_v12 = vld [vmem:[%s4478_s0 + $0x1d0] sm:$0xff]  ;;  %v83_v13 = vld [vmem:[%s4478_s0 + $0x1d8] sm:$0xff] }
  0x5c   :  { %v275_v30 = vmul.f32 %v2974_v4, %v140_v18  ;;  %v276_v31 = vmul.f32 %v2974_v4, %v141_v19  ;;  %v573_v32 = vpack.c.bf16 %v469_v15, %v468_v14  ;;  %v344_v33 = vadd.f32 %v2979_v5, %v209_v16  ;;  %v79_v4 = vld [vmem:[%s4478_s0 + $0x1b8] sm:$0xff]  ;;  %v85_v18 = vld [vmem:[%s4478_s0 + $0x1e8] sm:$0xff] }
  0x5d   :  { %2832 = vmatmul.mubr.msk.bf16.gmra.mrb[40].mxu0 %vm615_vm1, %v571_v58  ;;  %v345_v35 = vadd.f32 %v3557_v34, %v210_v17  ;;  %v574_v36 = vpack.c.bf16 %v471_v21, %v470_v20  ;;  %v346_v37 = vadd.f32 %v3557_v34, %v211_v22  ;;  %v347_v38 = vadd.f32 %v3557_v34, %v212_v23  ;;  %v84_v17 = vld [vmem:[%s4478_s0 + $0x1e0] sm:$0xff]  ;;  %v146_v22 = vld [vmem:[%s4478_s0 + $0x3d0] sm:$0xff]  ;;  %v147_v23 = vld [vmem:[%s4478_s0 + $0x3d8] sm:$0xff] }
  0x5e   :  { %2835 = vmatprep.mubr.msk.bf16.mxu0 %vm615_vm1, %v572_v61  ;;  %v605_v5 = vpack.c.bf16 %v533_v25, %v532_v24  ;;  %v408_v40 = vadd.f32 %v3557_v34, %v273_v26  ;;  %v409_v41 = vadd.f32 %v3557_v34, %v274_v27  ;;  %v606_v44 = vpack.c.bf16 %v535_v29, %v534_v28  ;;  %v148_v28 = vld [vmem:[%s4478_s0 + $0x3e0] sm:$0xff]  ;;  %v149_v29 = vld [vmem:[%s4478_s0 + $0x3e8] sm:$0xff] }
  0x5f   :  { %2896 = vmatmul.mubr.msk.bf16.gmra.mrb[40].mxu1 %vm615_vm1, %v603_v2  ;;  %v410_v45 = vadd.f32 %v3557_v34, %v275_v30  ;;  %v411_v46 = vadd.f32 %v3557_v34, %v276_v31  ;;  %v472_v49 = vmax.f32 %v344_v33, 0.0  ;;  %v473_v50 = vmax.f32 %v345_v35, 0.0 }
  0x60   :  { %2899 = vmatprep.mubr.msk.bf16.mxu1 %vm615_vm1, %v604_v9  ;;  %v213_v52 = vmul.f32 %v3588_v51, %v78_v39  ;;  %v214_v53 = vmul.f32 %v3588_v51, %v79_v4  ;;  %v474_v56 = vmax.f32 %v346_v37, 0.0  ;;  %v475_v57 = vmax.f32 %v347_v38, 0.0 }
  0x61   :  { %v215_v58 = vmul.f32 %v3588_v51, %v80_v42  ;;  %v216_v59 = vmul.f32 %v3588_v51, %v81_v43  ;;  %v536_v60 = vmax.f32 %v408_v40, 0.0  ;;  %v537_v61 = vmax.f32 %v409_v41, 0.0 }
  0x62   :  { %v277_v62 = vmul.f32 %v3588_v51, %v142_v47  ;;  %v278_v63 = vmul.f32 %v3588_v51, %v143_v48  ;;  %v538_v0 = vmax.f32 %v410_v45, 0.0  ;;  %v539_v1 = vmax.f32 %v411_v46, 0.0  ;;  %v86_v47 = vld [vmem:[%s4478_s0 + $0x1f0] sm:$0xff]  ;;  %v87_v48 = vld [vmem:[%s4478_s0 + $0x1f8] sm:$0xff] }
  0x63   :  { %v279_v2 = vmul.f32 %v3588_v51, %v144_v54  ;;  %v280_v3 = vmul.f32 %v3588_v51, %v145_v55  ;;  %v575_v6 = vpack.c.bf16 %v473_v50, %v472_v49  ;;  %v348_v7 = vadd.f32 %v3557_v34, %v213_v52 }
  0x64   :  { %v349_v8 = vadd.f32 %v3557_v34, %v214_v53  ;;  %v576_v9 = vpack.c.bf16 %v475_v57, %v474_v56  ;;  %v350_v10 = vadd.f32 %v3557_v34, %v215_v58  ;;  %v351_v11 = vadd.f32 %v3557_v34, %v216_v59  ;;  %v150_v56 = vld [vmem:[%s4478_s0 + $0x3f0] sm:$0xff]  ;;  %v151_v57 = vld [vmem:[%s4478_s0 + $0x3f8] sm:$0xff] }
  0x65   :  { %2836 = vmatmul.mubr.msk.bf16.gmra.mrb[44].mxu0 %vm615_vm1, %v573_v32  ;;  %v607_v14 = vpack.c.bf16 %v537_v61, %v536_v60  ;;  %v412_v15 = vadd.f32 %v3557_v34, %v277_v62  ;;  %v413_v16 = vadd.f32 %v3557_v34, %v278_v63  ;;  %v608_v19 = vpack.c.bf16 %v539_v1, %v538_v0 }
  0x66   :  { %2839 = vmatprep.mubr.msk.bf16.mxu0 %vm615_vm1, %v574_v36  ;;  %v414_v20 = vadd.f32 %v3557_v34, %v279_v2  ;;  %v415_v21 = vadd.f32 %v3557_v34, %v280_v3  ;;  %v476_v24 = vmax.f32 %v348_v7, 0.0  ;;  %v477_v25 = vmax.f32 %v349_v8, 0.0 }
  0x67   :  { %2900 = vmatmul.mubr.msk.bf16.gmra.mrb[44].mxu1 %vm615_vm1, %v605_v5  ;;  %v217_v26 = vmul.f32 %v3588_v51, %v82_v12  ;;  %v218_v27 = vmul.f32 %v3588_v51, %v83_v13  ;;  %v478_v30 = vmax.f32 %v350_v10, 0.0  ;;  %v479_v31 = vmax.f32 %v351_v11, 0.0 }
  0x68   :  { %2903 = vmatprep.mubr.msk.bf16.mxu1 %vm615_vm1, %v606_v44  ;;  %v219_v32 = vmul.f32 %v3588_v51, %v84_v17  ;;  %v220_v33 = vmul.f32 %v3588_v51, %v85_v18  ;;  %v540_v35 = vmax.f32 %v412_v15, 0.0  ;;  %v541_v36 = vmax.f32 %v413_v16, 0.0 }
  0x69   :  { %v281_v37 = vmul.f32 %v3588_v51, %v146_v22  ;;  %v282_v38 = vmul.f32 %v3588_v51, %v147_v23  ;;  %v542_v39 = vmax.f32 %v414_v20, 0.0  ;;  %v543_v4 = vmax.f32 %v415_v21, 0.0  ;;  %v3697_v22 = vld [vmem:[%s4482_s5] ss:$0 sm:$0xff] }
  0x6a   :  { %v283_v5 = vmul.f32 %v3588_v51, %v148_v28  ;;  %v284_v40 = vmul.f32 %v3588_v51, %v149_v29  ;;  %v577_v41 = vpack.c.bf16 %v477_v25, %v476_v24  ;;  %v352_v42 = vadd.f32 %v3557_v34, %v217_v26 }
  0x6b   :  { %v353_v43 = vadd.f32 %v3557_v34, %v218_v27  ;;  %v578_v44 = vpack.c.bf16 %v479_v31, %v478_v30  ;;  %v354_v45 = vadd.f32 %v3557_v34, %v219_v32  ;;  %v355_v46 = vadd.f32 %v3557_v34, %v220_v33 }
  0x6c   :  { %v609_v49 = vpack.c.bf16 %v541_v36, %v540_v35  ;;  %v416_v50 = vadd.f32 %v3557_v34, %v281_v37  ;;  %v417_v52 = vadd.f32 %v3557_v34, %v282_v38  ;;  %v610_v53 = vpack.c.bf16 %v543_v4, %v542_v39 }
  0x6d   :  { %2840 = vmatmul.mubr.msk.bf16.gmra.mrb[48].mxu0 %vm615_vm1, %v575_v6  ;;  %v418_v54 = vadd.f32 %v3557_v34, %v283_v5  ;;  %v419_v55 = vadd.f32 %v3557_v34, %v284_v40  ;;  %v480_v58 = vmax.f32 %v352_v42, 0.0  ;;  %v481_v59 = vmax.f32 %v353_v43, 0.0 }
  0x6e   :  { %2843 = vmatprep.mubr.msk.bf16.mxu0 %vm615_vm1, %v576_v9  ;;  %v221_v60 = vmul.f32 %v3588_v51, %v86_v47  ;;  %v222_v61 = vmul.f32 %v3588_v51, %v87_v48  ;;  %v482_v62 = vmax.f32 %v354_v45, 0.0  ;;  %v483_v63 = vmax.f32 %v355_v46, 0.0 }
  0x6f   :  { %2904 = vmatmul.mubr.msk.bf16.gmra.mrb[48].mxu1 %vm615_vm1, %v607_v14  ;;  %v544_v0 = vmax.f32 %v416_v50, 0.0  ;;  %v545_v1 = vmax.f32 %v417_v52, 0.0  ;;  %v285_v2 = vmul.f32 %v3588_v51, %v150_v56  ;;  %v286_v3 = vmul.f32 %v3588_v51, %v151_v57 }
  0x70   :  { %2907 = vmatprep.mubr.msk.bf16.mxu1 %vm615_vm1, %v608_v19  ;;  %v546_v6 = vmax.f32 %v418_v54, 0.0  ;;  %v547_v7 = vmax.f32 %v419_v55, 0.0  ;;  %v579_v8 = vpack.c.bf16 %v481_v59, %v480_v58  ;;  %v356_v9 = vadd.f32 %v3557_v34, %v221_v60 }
  0x71   :  { %v357_v10 = vadd.f32 %v3557_v34, %v222_v61  ;;  %v580_v11 = vpack.c.bf16 %v483_v63, %v482_v62  ;;  %v611_v12 = vpack.c.bf16 %v545_v1, %v544_v0  ;;  %v420_v13 = vadd.f32 %v3557_v34, %v285_v2 }
  0x72   :  { %v421_v14 = vadd.f32 %v3557_v34, %v286_v3  ;;  %v612_v15 = vpack.c.bf16 %v547_v7, %v546_v6  ;;  %v484_v16 = vmax.f32 %v356_v9, 0.0  ;;  %v3692_v34 = vld [vmem:[%s4481_s4] ss:$0 sm:$0xff] }
  0x73   :  { %v485_v51 = vmax.f32 %v357_v10, 0.0  ;;  %v548_v17 = vmax.f32 %v420_v13, 0.0 }
  0x74   :  { %v549_v18 = vmax.f32 %v421_v14, 0.0 }
  0x75   :  { %2844 = vmatmul.mubr.msk.bf16.gmra.mrb[52].mxu0 %vm615_vm1, %v577_v41  ;;  %v581_v19 = vpack.c.bf16 %v485_v51, %v484_v16 }
  0x76   :  { %2847 = vmatprep.mubr.msk.bf16.mxu0 %vm615_vm1, %v578_v44  ;;  %v613_v20 = vpack.c.bf16 %v549_v18, %v548_v17 }
  0x77   :  { %2908 = vmatmul.mubr.msk.bf16.gmra.mrb[52].mxu1 %vm615_vm1, %v609_v49 }
  0x78   :  { %2911 = vmatprep.mubr.msk.bf16.mxu1 %vm615_vm1, %v610_v53 }
  0x7d   :  { %2848 = vmatmul.mubr.msk.bf16.gmra.mrb[56].mxu0 %vm615_vm1, %v579_v8 }
  0x7e   :  { %2851 = vmatprep.mubr.msk.bf16.mxu0 %vm615_vm1, %v580_v11 }
  0x7f   :  { %2912 = vmatmul.mubr.msk.bf16.gmra.mrb[56].mxu1 %vm615_vm1, %v611_v12 }
  0x80   :  { %2915 = vmatprep.mubr.msk.bf16.mxu1 %vm615_vm1, %v612_v15 }
  0x85   :  { %2852 = vmatmul.mubr.msk.bf16.gmra.mrb[60].mxu0 %vm615_vm1, %v581_v19 }
  0x87   :  { %2916 = vmatmul.mubr.msk.bf16.gmra.mrb[60].mxu1 %vm615_vm1, %v613_v20 }
  0xe0   :  { %v2793_v21 = vpop.f32.mrb[0].mxu0 }
  0xe1   :  { %v1366_v23 = vmul.f32 %v2793_v21, %v3692_v34  ;;  %v846_v24 = vpop.f32.mrb[1].mxu0 }
  0xe2   :  { %v2857_v25 = vpop.f32.mrb[0].mxu1  ;;  %v1364_v26 = vmul.f32 %v3692_v34, %v846_v24  ;;  %v2794_v27 = vpop.f32.mrb[2].mxu0 }
  0xe3   :  { %v1501_v28 = vadd.f32 %v3697_v22, %v1366_v23  ;;  %v1430_v29 = vmul.f32 %v2857_v25, %v3692_v34  ;;  %v1102_v30 = vpop.f32.mrb[1].mxu1  ;;  %v1367_v31 = vmul.f32 %v2794_v27, %v3692_v34  ;;  %v849_v32 = vpop.f32.mrb[3].mxu0 }
  0xe4   :  { %v1499_v33 = vadd.f32 %v3697_v22, %v1364_v26  ;;  %v1428_v35 = vmul.f32 %v3692_v34, %v1102_v30  ;;  %v2858_v36 = vpop.f32.mrb[2].mxu1  ;;  %v1365_v37 = vmul.f32 %v3692_v34, %v849_v32 }
  0xe5   :  { %v1629_v38 = vmax.f32 %v1501_v28, 0.0  ;;  %v1565_v39 = vadd.f32 %v3697_v22, %v1430_v29  ;;  %v1502_v4 = vadd.f32 %v3697_v22, %v1367_v31  ;;  %v1431_v5 = vmul.f32 %v2858_v36, %v3692_v34  ;;  %v1105_v40 = vpop.f32.mrb[3].mxu1 }
  0xe6   :  { %v1627_v41 = vmax.f32 %v1499_v33, 0.0  ;;  %v1563_v42 = vadd.f32 %v3697_v22, %v1428_v35  ;;  %v1500_v43 = vadd.f32 %v3697_v22, %v1365_v37  ;;  %v1429_v44 = vmul.f32 %v3692_v34, %v1105_v40 }
  0xe7   :  { %v2598_v45 = vpack.c.bf16 %v1629_v38, %v1629_v38  ;;  %v1693_v46 = vmax.f32 %v1565_v39, 0.0  ;;  %v1630_v47 = vmax.f32 %v1502_v4, 0.0  ;;  %v1566_v48 = vadd.f32 %v3697_v22, %v1431_v5 }
  0xe8   :  { %v2596_v49 = vpack.c.bf16 %v1627_v41, %v1627_v41  ;;  %v1691_v50 = vmax.f32 %v1563_v42, 0.0  ;;  %v1628_v52 = vmax.f32 %v1500_v43, 0.0  ;;  %v1564_v53 = vadd.f32 %v3697_v22, %v1429_v44  ;;  %v2797_v54 = vpop.f32.mrb[4].mxu0 }
  0xe9   :  { %2270 = vst.msk [vmem:[%s4483_s6 + $0x8] sm:$0xf] %vm2267_vm2, %v2598_v45  ;;  %v2662_v55 = vpack.c.bf16 %v1693_v46, %v1693_v46  ;;  %v2599_v56 = vpack.c.bf16 %v1630_v47, %v1630_v47  ;;  %v1694_v57 = vmax.f32 %v1566_v48, 0.0  ;;  %v1370_v58 = vmul.f32 %v2797_v54, %v3692_v34  ;;  %v862_v59 = vpop.f32.mrb[5].mxu0 }
  0xea   :  { %2268 = vst.msk [vmem:[%s4483_s6] sm:$0xf] %vm2267_vm2, %v2596_v49  ;;  %v2660_v60 = vpack.c.bf16 %v1691_v50, %v1691_v50  ;;  %v2597_v61 = vpack.c.bf16 %v1628_v52, %v1628_v52  ;;  %v1692_v62 = vmax.f32 %v1564_v53, 0.0  ;;  %v2861_v63 = vpop.f32.mrb[4].mxu1  ;;  %v1368_v0 = vmul.f32 %v3692_v34, %v862_v59  ;;  %v2798_v1 = vpop.f32.mrb[6].mxu0 }
  0xeb   :  { %2334 = vst.msk [vmem:[%s4483_s6 + $0x108] sm:$0xf] %vm2267_vm2, %v2662_v55  ;;  %2271 = vst.msk [vmem:[%s4483_s6 + $0xc] sm:$0xf] %vm2267_vm2, %v2599_v56  ;;  %v2663_v2 = vpack.c.bf16 %v1694_v57, %v1694_v57  ;;  %v1505_v3 = vadd.f32 %v3697_v22, %v1370_v58  ;;  %v1434_v6 = vmul.f32 %v2861_v63, %v3692_v34  ;;  %v1118_v7 = vpop.f32.mrb[5].mxu1  ;;  %v865_v9 = vpop.f32.mrb[7].mxu0 }
  0xec   :  { %v1371_v8 = vmul.f32 %v2798_v1, %v3692_v34  ;;  %2332 = vst.msk [vmem:[%s4483_s6 + $0x100] sm:$0xf] %vm2267_vm2, %v2660_v60  ;;  %2269 = vst.msk [vmem:[%s4483_s6 + $0x4] sm:$0xf] %vm2267_vm2, %v2597_v61  ;;  %v2661_v10 = vpack.c.bf16 %v1692_v62, %v1692_v62  ;;  %v1503_v11 = vadd.f32 %v3697_v22, %v1368_v0  ;;  %v2862_v13 = vpop.f32.mrb[6].mxu1 }
  0xed   :  { %v1432_v12 = vmul.f32 %v3692_v34, %v1118_v7  ;;  %v1369_v14 = vmul.f32 %v3692_v34, %v865_v9  ;;  %2335 = vst.msk [vmem:[%s4483_s6 + $0x10c] sm:$0xf] %vm2267_vm2, %v2663_v2  ;;  %v1633_v15 = vmax.f32 %v1505_v3, 0.0  ;;  %v1569_v16 = vadd.f32 %v3697_v22, %v1434_v6  ;;  %v1121_v18 = vpop.f32.mrb[7].mxu1 }
  0xee   :  { %v1506_v51 = vadd.f32 %v3697_v22, %v1371_v8  ;;  %v1435_v17 = vmul.f32 %v2862_v13, %v3692_v34  ;;  %2333 = vst.msk [vmem:[%s4483_s6 + $0x104] sm:$0xf] %vm2267_vm2, %v2661_v10  ;;  %v1631_v19 = vmax.f32 %v1503_v11, 0.0  ;;  %v1433_v23 = vmul.f32 %v3692_v34, %v1121_v18 }
  0xef   :  { %v1567_v20 = vadd.f32 %v3697_v22, %v1432_v12  ;;  %v1504_v21 = vadd.f32 %v3697_v22, %v1369_v14  ;;  %v2602_v24 = vpack.c.bf16 %v1633_v15, %v1633_v15  ;;  %v1697_v25 = vmax.f32 %v1569_v16, 0.0 }
  0xf0   :  { %v1634_v26 = vmax.f32 %v1506_v51, 0.0  ;;  %v1570_v27 = vadd.f32 %v3697_v22, %v1435_v17  ;;  %v2600_v28 = vpack.c.bf16 %v1631_v19, %v1631_v19  ;;  %v1568_v31 = vadd.f32 %v3697_v22, %v1433_v23  ;;  %v2801_v32 = vpop.f32.mrb[8].mxu0 }
  0xf1   :  { %v1695_v29 = vmax.f32 %v1567_v20, 0.0  ;;  %v1632_v30 = vmax.f32 %v1504_v21, 0.0  ;;  %2274 = vst.msk [vmem:[%s4483_s6 + $0x18] sm:$0xf] %vm2267_vm2, %v2602_v24  ;;  %v2666_v33 = vpack.c.bf16 %v1697_v25, %v1697_v25  ;;  %v1374_v37 = vmul.f32 %v2801_v32, %v3692_v34  ;;  %v878_v38 = vpop.f32.mrb[9].mxu0 }
  0xf2   :  { %v2603_v35 = vpack.c.bf16 %v1634_v26, %v1634_v26  ;;  %v1698_v36 = vmax.f32 %v1570_v27, 0.0  ;;  %2272 = vst.msk [vmem:[%s4483_s6 + $0x10] sm:$0xf] %vm2267_vm2, %v2600_v28  ;;  %v1696_v5 = vmax.f32 %v1568_v31, 0.0  ;;  %v2865_v40 = vpop.f32.mrb[8].mxu1  ;;  %v1372_v41 = vmul.f32 %v3692_v34, %v878_v38  ;;  %v2802_v42 = vpop.f32.mrb[10].mxu0 }
  0xf3   :  { %v2664_v39 = vpack.c.bf16 %v1695_v29, %v1695_v29  ;;  %v2601_v4 = vpack.c.bf16 %v1632_v30, %v1632_v30  ;;  %2338 = vst.msk [vmem:[%s4483_s6 + $0x118] sm:$0xf] %vm2267_vm2, %v2666_v33  ;;  %v1509_v44 = vadd.f32 %v3697_v22, %v1374_v37  ;;  %v1438_v45 = vmul.f32 %v2865_v40, %v3692_v34  ;;  %v1134_v46 = vpop.f32.mrb[9].mxu1  ;;  %v881_v48 = vpop.f32.mrb[11].mxu0 }
  0xf4   :  { %2275 = vst.msk [vmem:[%s4483_s6 + $0x1c] sm:$0xf] %vm2267_vm2, %v2603_v35  ;;  %v2667_v43 = vpack.c.bf16 %v1698_v36, %v1698_v36  ;;  %v1375_v47 = vmul.f32 %v2802_v42, %v3692_v34  ;;  %v2665_v49 = vpack.c.bf16 %v1696_v5, %v1696_v5  ;;  %v1507_v50 = vadd.f32 %v3697_v22, %v1372_v41  ;;  %v2866_v53 = vpop.f32.mrb[10].mxu1 }
  0xf5   :  { %2336 = vst.msk [vmem:[%s4483_s6 + $0x110] sm:$0xf] %vm2267_vm2, %v2664_v39  ;;  %2273 = vst.msk [vmem:[%s4483_s6 + $0x14] sm:$0xf] %vm2267_vm2, %v2601_v4  ;;  %v1436_v52 = vmul.f32 %v3692_v34, %v1134_v46  ;;  %v1373_v54 = vmul.f32 %v3692_v34, %v881_v48  ;;  %v1637_v55 = vmax.f32 %v1509_v44, 0.0  ;;  %v1573_v56 = vadd.f32 %v3697_v22, %v1438_v45  ;;  %v1137_v59 = vpop.f32.mrb[11].mxu1 }
  0xf6   :  { %2339 = vst.msk [vmem:[%s4483_s6 + $0x11c] sm:$0xf] %vm2267_vm2, %v2667_v43  ;;  %v1510_v57 = vadd.f32 %v3697_v22, %v1375_v47  ;;  %v1439_v58 = vmul.f32 %v2866_v53, %v3692_v34  ;;  %2337 = vst.msk [vmem:[%s4483_s6 + $0x114] sm:$0xf] %vm2267_vm2, %v2665_v49  ;;  %v1635_v60 = vmax.f32 %v1507_v50, 0.0  ;;  %v1437_v63 = vmul.f32 %v3692_v34, %v1137_v59 }
  0xf7   :  { %v1571_v61 = vadd.f32 %v3697_v22, %v1436_v52  ;;  %v1508_v62 = vadd.f32 %v3697_v22, %v1373_v54  ;;  %v2606_v0 = vpack.c.bf16 %v1637_v55, %v1637_v55  ;;  %v1701_v1 = vmax.f32 %v1573_v56, 0.0 }
  0xf8   :  { %v1638_v2 = vmax.f32 %v1510_v57, 0.0  ;;  %v1574_v3 = vadd.f32 %v3697_v22, %v1439_v58  ;;  %v2604_v6 = vpack.c.bf16 %v1635_v60, %v1635_v60  ;;  %v1572_v9 = vadd.f32 %v3697_v22, %v1437_v63  ;;  %v2805_v10 = vpop.f32.mrb[12].mxu0 }
  0xf9   :  { %v1699_v7 = vmax.f32 %v1571_v61, 0.0  ;;  %v1636_v8 = vmax.f32 %v1508_v62, 0.0  ;;  %2278 = vst.msk [vmem:[%s4483_s6 + $0x28] sm:$0xf] %vm2267_vm2, %v2606_v0  ;;  %v2670_v11 = vpack.c.bf16 %v1701_v1, %v1701_v1  ;;  %v1378_v14 = vmul.f32 %v2805_v10, %v3692_v34  ;;  %v894_v15 = vpop.f32.mrb[13].mxu0 }
  0xfa   :  { %v2607_v12 = vpack.c.bf16 %v1638_v2, %v1638_v2  ;;  %v1702_v13 = vmax.f32 %v1574_v3, 0.0  ;;  %2276 = vst.msk [vmem:[%s4483_s6 + $0x20] sm:$0xf] %vm2267_vm2, %v2604_v6  ;;  %v1700_v17 = vmax.f32 %v1572_v9, 0.0  ;;  %v2869_v18 = vpop.f32.mrb[12].mxu1  ;;  %v1376_v19 = vmul.f32 %v3692_v34, %v894_v15  ;;  %v2806_v20 = vpop.f32.mrb[14].mxu0 }
  0xfb   :  { %v2668_v16 = vpack.c.bf16 %v1699_v7, %v1699_v7  ;;  %v2605_v51 = vpack.c.bf16 %v1636_v8, %v1636_v8  ;;  %2342 = vst.msk [vmem:[%s4483_s6 + $0x128] sm:$0xf] %vm2267_vm2, %v2670_v11  ;;  %v1513_v23 = vadd.f32 %v3697_v22, %v1378_v14  ;;  %v1442_v24 = vmul.f32 %v2869_v18, %v3692_v34  ;;  %v1150_v25 = vpop.f32.mrb[13].mxu1  ;;  %v897_v27 = vpop.f32.mrb[15].mxu0 }
  0xfc   :  { %2279 = vst.msk [vmem:[%s4483_s6 + $0x2c] sm:$0xf] %vm2267_vm2, %v2607_v12  ;;  %v2671_v21 = vpack.c.bf16 %v1702_v13, %v1702_v13  ;;  %v1379_v26 = vmul.f32 %v2806_v20, %v3692_v34  ;;  %v2669_v28 = vpack.c.bf16 %v1700_v17, %v1700_v17  ;;  %v1511_v29 = vadd.f32 %v3697_v22, %v1376_v19  ;;  %v2870_v31 = vpop.f32.mrb[14].mxu1 }
  0xfd   :  { %2340 = vst.msk [vmem:[%s4483_s6 + $0x120] sm:$0xf] %vm2267_vm2, %v2668_v16  ;;  %2277 = vst.msk [vmem:[%s4483_s6 + $0x24] sm:$0xf] %vm2267_vm2, %v2605_v51  ;;  %v1440_v30 = vmul.f32 %v3692_v34, %v1150_v25  ;;  %v1377_v32 = vmul.f32 %v3692_v34, %v897_v27  ;;  %v1641_v33 = vmax.f32 %v1513_v23, 0.0  ;;  %v1577_v35 = vadd.f32 %v3697_v22, %v1442_v24  ;;  %v1153_v38 = vpop.f32.mrb[15].mxu1 }
  0xfe   :  { %2343 = vst.msk [vmem:[%s4483_s6 + $0x12c] sm:$0xf] %vm2267_vm2, %v2671_v21  ;;  %v1514_v36 = vadd.f32 %v3697_v22, %v1379_v26  ;;  %v1443_v37 = vmul.f32 %v2870_v31, %v3692_v34  ;;  %2341 = vst.msk [vmem:[%s4483_s6 + $0x124] sm:$0xf] %vm2267_vm2, %v2669_v28  ;;  %v1639_v39 = vmax.f32 %v1511_v29, 0.0  ;;  %v1441_v40 = vmul.f32 %v3692_v34, %v1153_v38 }
  0xff   :  { %v1575_v4 = vadd.f32 %v3697_v22, %v1440_v30  ;;  %v1512_v5 = vadd.f32 %v3697_v22, %v1377_v32  ;;  %v2610_v41 = vpack.c.bf16 %v1641_v33, %v1641_v33  ;;  %v1705_v42 = vmax.f32 %v1577_v35, 0.0 }
 0x100   :  { %v1642_v43 = vmax.f32 %v1514_v36, 0.0  ;;  %v1578_v44 = vadd.f32 %v3697_v22, %v1443_v37  ;;  %v2608_v45 = vpack.c.bf16 %v1639_v39, %v1639_v39  ;;  %v1576_v48 = vadd.f32 %v3697_v22, %v1441_v40  ;;  %v2809_v49 = vpop.f32.mrb[16].mxu0 }
 0x101   :  { %v1703_v46 = vmax.f32 %v1575_v4, 0.0  ;;  %v1640_v47 = vmax.f32 %v1512_v5, 0.0  ;;  %2282 = vst.msk [vmem:[%s4483_s6 + $0x38] sm:$0xf] %vm2267_vm2, %v2610_v41  ;;  %v2674_v50 = vpack.c.bf16 %v1705_v42, %v1705_v42  ;;  %v1382_v54 = vmul.f32 %v2809_v49, %v3692_v34  ;;  %v910_v55 = vpop.f32.mrb[17].mxu0 }
 0x102   :  { %v2611_v52 = vpack.c.bf16 %v1642_v43, %v1642_v43  ;;  %v1706_v53 = vmax.f32 %v1578_v44, 0.0  ;;  %2280 = vst.msk [vmem:[%s4483_s6 + $0x30] sm:$0xf] %vm2267_vm2, %v2608_v45  ;;  %v1704_v58 = vmax.f32 %v1576_v48, 0.0  ;;  %v2873_v59 = vpop.f32.mrb[16].mxu1  ;;  %v1380_v60 = vmul.f32 %v3692_v34, %v910_v55  ;;  %v2810_v61 = vpop.f32.mrb[18].mxu0 }
 0x103   :  { %v2672_v56 = vpack.c.bf16 %v1703_v46, %v1703_v46  ;;  %v2609_v57 = vpack.c.bf16 %v1640_v47, %v1640_v47  ;;  %2346 = vst.msk [vmem:[%s4483_s6 + $0x138] sm:$0xf] %vm2267_vm2, %v2674_v50  ;;  %v1517_v63 = vadd.f32 %v3697_v22, %v1382_v54  ;;  %v1446_v0 = vmul.f32 %v2873_v59, %v3692_v34  ;;  %v1166_v1 = vpop.f32.mrb[17].mxu1  ;;  %v913_v3 = vpop.f32.mrb[19].mxu0 }
 0x104   :  { %2283 = vst.msk [vmem:[%s4483_s6 + $0x3c] sm:$0xf] %vm2267_vm2, %v2611_v52  ;;  %v2675_v62 = vpack.c.bf16 %v1706_v53, %v1706_v53  ;;  %v1383_v2 = vmul.f32 %v2810_v61, %v3692_v34  ;;  %v2673_v6 = vpack.c.bf16 %v1704_v58, %v1704_v58  ;;  %v1515_v7 = vadd.f32 %v3697_v22, %v1380_v60  ;;  %v2874_v9 = vpop.f32.mrb[18].mxu1 }
 0x105   :  { %2344 = vst.msk [vmem:[%s4483_s6 + $0x130] sm:$0xf] %vm2267_vm2, %v2672_v56  ;;  %2281 = vst.msk [vmem:[%s4483_s6 + $0x34] sm:$0xf] %vm2267_vm2, %v2609_v57  ;;  %v1444_v8 = vmul.f32 %v3692_v34, %v1166_v1  ;;  %v1381_v10 = vmul.f32 %v3692_v34, %v913_v3  ;;  %v1645_v11 = vmax.f32 %v1517_v63, 0.0  ;;  %v1581_v12 = vadd.f32 %v3697_v22, %v1446_v0  ;;  %v1169_v15 = vpop.f32.mrb[19].mxu1 }
 0x106   :  { %2347 = vst.msk [vmem:[%s4483_s6 + $0x13c] sm:$0xf] %vm2267_vm2, %v2675_v62  ;;  %v1518_v13 = vadd.f32 %v3697_v22, %v1383_v2  ;;  %v1447_v14 = vmul.f32 %v2874_v9, %v3692_v34  ;;  %2345 = vst.msk [vmem:[%s4483_s6 + $0x134] sm:$0xf] %vm2267_vm2, %v2673_v6  ;;  %v1643_v16 = vmax.f32 %v1515_v7, 0.0  ;;  %v1445_v18 = vmul.f32 %v3692_v34, %v1169_v15 }
 0x107   :  { %v1579_v51 = vadd.f32 %v3697_v22, %v1444_v8  ;;  %v1516_v17 = vadd.f32 %v3697_v22, %v1381_v10  ;;  %v2614_v19 = vpack.c.bf16 %v1645_v11, %v1645_v11  ;;  %v1709_v20 = vmax.f32 %v1581_v12, 0.0 }
 0x108   :  { %v1646_v21 = vmax.f32 %v1518_v13, 0.0  ;;  %v1582_v23 = vadd.f32 %v3697_v22, %v1447_v14  ;;  %v2612_v24 = vpack.c.bf16 %v1643_v16, %v1643_v16  ;;  %v1580_v27 = vadd.f32 %v3697_v22, %v1445_v18  ;;  %v2813_v28 = vpop.f32.mrb[20].mxu0 }
 0x109   :  { %v1707_v25 = vmax.f32 %v1579_v51, 0.0  ;;  %v1644_v26 = vmax.f32 %v1516_v17, 0.0  ;;  %2286 = vst.msk [vmem:[%s4483_s6 + $0x48] sm:$0xf] %vm2267_vm2, %v2614_v19  ;;  %v2678_v29 = vpack.c.bf16 %v1709_v20, %v1709_v20  ;;  %v1386_v32 = vmul.f32 %v2813_v28, %v3692_v34  ;;  %v926_v33 = vpop.f32.mrb[21].mxu0 }
 0x10a   :  { %v2615_v30 = vpack.c.bf16 %v1646_v21, %v1646_v21  ;;  %v1710_v31 = vmax.f32 %v1582_v23, 0.0  ;;  %2284 = vst.msk [vmem:[%s4483_s6 + $0x40] sm:$0xf] %vm2267_vm2, %v2612_v24  ;;  %v1708_v37 = vmax.f32 %v1580_v27, 0.0  ;;  %v2877_v38 = vpop.f32.mrb[20].mxu1  ;;  %v1384_v39 = vmul.f32 %v3692_v34, %v926_v33  ;;  %v2814_v4 = vpop.f32.mrb[22].mxu0 }
 0x10b   :  { %v2676_v35 = vpack.c.bf16 %v1707_v25, %v1707_v25  ;;  %v2613_v36 = vpack.c.bf16 %v1644_v26, %v1644_v26  ;;  %2350 = vst.msk [vmem:[%s4483_s6 + $0x148] sm:$0xf] %vm2267_vm2, %v2678_v29  ;;  %v1521_v40 = vadd.f32 %v3697_v22, %v1386_v32  ;;  %v1450_v41 = vmul.f32 %v2877_v38, %v3692_v34  ;;  %v1182_v42 = vpop.f32.mrb[21].mxu1  ;;  %v929_v44 = vpop.f32.mrb[23].mxu0 }
 0x10c   :  { %2287 = vst.msk [vmem:[%s4483_s6 + $0x4c] sm:$0xf] %vm2267_vm2, %v2615_v30  ;;  %v2679_v5 = vpack.c.bf16 %v1710_v31, %v1710_v31  ;;  %v1387_v43 = vmul.f32 %v2814_v4, %v3692_v34  ;;  %v2677_v45 = vpack.c.bf16 %v1708_v37, %v1708_v37  ;;  %v1519_v46 = vadd.f32 %v3697_v22, %v1384_v39  ;;  %v2878_v48 = vpop.f32.mrb[22].mxu1 }
 0x10d   :  { %2348 = vst.msk [vmem:[%s4483_s6 + $0x140] sm:$0xf] %vm2267_vm2, %v2676_v35  ;;  %2285 = vst.msk [vmem:[%s4483_s6 + $0x44] sm:$0xf] %vm2267_vm2, %v2613_v36  ;;  %v1448_v47 = vmul.f32 %v3692_v34, %v1182_v42  ;;  %v1385_v49 = vmul.f32 %v3692_v34, %v929_v44  ;;  %v1649_v50 = vmax.f32 %v1521_v40, 0.0  ;;  %v1585_v52 = vadd.f32 %v3697_v22, %v1450_v41  ;;  %v1185_v55 = vpop.f32.mrb[23].mxu1 }
 0x10e   :  { %2351 = vst.msk [vmem:[%s4483_s6 + $0x14c] sm:$0xf] %vm2267_vm2, %v2679_v5  ;;  %v1522_v53 = vadd.f32 %v3697_v22, %v1387_v43  ;;  %v1451_v54 = vmul.f32 %v2878_v48, %v3692_v34  ;;  %2349 = vst.msk [vmem:[%s4483_s6 + $0x144] sm:$0xf] %vm2267_vm2, %v2677_v45  ;;  %v1647_v56 = vmax.f32 %v1519_v46, 0.0  ;;  %v1449_v59 = vmul.f32 %v3692_v34, %v1185_v55 }
 0x10f   :  { %v1583_v57 = vadd.f32 %v3697_v22, %v1448_v47  ;;  %v1520_v58 = vadd.f32 %v3697_v22, %v1385_v49  ;;  %v2618_v60 = vpack.c.bf16 %v1649_v50, %v1649_v50  ;;  %v1713_v61 = vmax.f32 %v1585_v52, 0.0 }
 0x110   :  { %v1650_v62 = vmax.f32 %v1522_v53, 0.0  ;;  %v1586_v63 = vadd.f32 %v3697_v22, %v1451_v54  ;;  %v2616_v0 = vpack.c.bf16 %v1647_v56, %v1647_v56  ;;  %v1584_v3 = vadd.f32 %v3697_v22, %v1449_v59  ;;  %v2817_v6 = vpop.f32.mrb[24].mxu0 }
 0x111   :  { %v1711_v1 = vmax.f32 %v1583_v57, 0.0  ;;  %v1648_v2 = vmax.f32 %v1520_v58, 0.0  ;;  %2290 = vst.msk [vmem:[%s4483_s6 + $0x58] sm:$0xf] %vm2267_vm2, %v2618_v60  ;;  %v2682_v7 = vpack.c.bf16 %v1713_v61, %v1713_v61  ;;  %v1390_v10 = vmul.f32 %v2817_v6, %v3692_v34  ;;  %v942_v11 = vpop.f32.mrb[25].mxu0 }
 0x112   :  { %v2619_v8 = vpack.c.bf16 %v1650_v62, %v1650_v62  ;;  %v1714_v9 = vmax.f32 %v1586_v63, 0.0  ;;  %2288 = vst.msk [vmem:[%s4483_s6 + $0x50] sm:$0xf] %vm2267_vm2, %v2616_v0  ;;  %v1712_v14 = vmax.f32 %v1584_v3, 0.0  ;;  %v2881_v15 = vpop.f32.mrb[24].mxu1  ;;  %v1388_v16 = vmul.f32 %v3692_v34, %v942_v11  ;;  %v2818_v51 = vpop.f32.mrb[26].mxu0 }
 0x113   :  { %v2680_v12 = vpack.c.bf16 %v1711_v1, %v1711_v1  ;;  %v2617_v13 = vpack.c.bf16 %v1648_v2, %v1648_v2  ;;  %2354 = vst.msk [vmem:[%s4483_s6 + $0x158] sm:$0xf] %vm2267_vm2, %v2682_v7  ;;  %v1525_v18 = vadd.f32 %v3697_v22, %v1390_v10  ;;  %v1454_v19 = vmul.f32 %v2881_v15, %v3692_v34  ;;  %v1198_v20 = vpop.f32.mrb[25].mxu1  ;;  %v945_v23 = vpop.f32.mrb[27].mxu0 }
 0x114   :  { %2291 = vst.msk [vmem:[%s4483_s6 + $0x5c] sm:$0xf] %vm2267_vm2, %v2619_v8  ;;  %v2683_v17 = vpack.c.bf16 %v1714_v9, %v1714_v9  ;;  %v1391_v21 = vmul.f32 %v2818_v51, %v3692_v34  ;;  %v2681_v24 = vpack.c.bf16 %v1712_v14, %v1712_v14  ;;  %v1523_v25 = vadd.f32 %v3697_v22, %v1388_v16  ;;  %v2882_v27 = vpop.f32.mrb[26].mxu1 }
 0x115   :  { %2352 = vst.msk [vmem:[%s4483_s6 + $0x150] sm:$0xf] %vm2267_vm2, %v2680_v12  ;;  %2289 = vst.msk [vmem:[%s4483_s6 + $0x54] sm:$0xf] %vm2267_vm2, %v2617_v13  ;;  %v1452_v26 = vmul.f32 %v3692_v34, %v1198_v20  ;;  %v1389_v28 = vmul.f32 %v3692_v34, %v945_v23  ;;  %v1653_v29 = vmax.f32 %v1525_v18, 0.0  ;;  %v1589_v30 = vadd.f32 %v3697_v22, %v1454_v19  ;;  %v1201_v33 = vpop.f32.mrb[27].mxu1 }
 0x116   :  { %2355 = vst.msk [vmem:[%s4483_s6 + $0x15c] sm:$0xf] %vm2267_vm2, %v2683_v17  ;;  %v1526_v31 = vadd.f32 %v3697_v22, %v1391_v21  ;;  %v1455_v32 = vmul.f32 %v2882_v27, %v3692_v34  ;;  %2353 = vst.msk [vmem:[%s4483_s6 + $0x154] sm:$0xf] %vm2267_vm2, %v2681_v24  ;;  %v1651_v35 = vmax.f32 %v1523_v25, 0.0  ;;  %v1453_v38 = vmul.f32 %v3692_v34, %v1201_v33 }
 0x117   :  { %v1587_v36 = vadd.f32 %v3697_v22, %v1452_v26  ;;  %v1524_v37 = vadd.f32 %v3697_v22, %v1389_v28  ;;  %v2622_v39 = vpack.c.bf16 %v1653_v29, %v1653_v29  ;;  %v1717_v4 = vmax.f32 %v1589_v30, 0.0 }
 0x118   :  { %v1654_v5 = vmax.f32 %v1526_v31, 0.0  ;;  %v1590_v40 = vadd.f32 %v3697_v22, %v1455_v32  ;;  %v2620_v41 = vpack.c.bf16 %v1651_v35, %v1651_v35  ;;  %v1588_v44 = vadd.f32 %v3697_v22, %v1453_v38  ;;  %v2821_v45 = vpop.f32.mrb[28].mxu0 }
 0x119   :  { %v1715_v42 = vmax.f32 %v1587_v36, 0.0  ;;  %v1652_v43 = vmax.f32 %v1524_v37, 0.0  ;;  %2294 = vst.msk [vmem:[%s4483_s6 + $0x68] sm:$0xf] %vm2267_vm2, %v2622_v39  ;;  %v2686_v46 = vpack.c.bf16 %v1717_v4, %v1717_v4  ;;  %v1394_v49 = vmul.f32 %v2821_v45, %v3692_v34  ;;  %v958_v50 = vpop.f32.mrb[29].mxu0 }
 0x11a   :  { %v2623_v47 = vpack.c.bf16 %v1654_v5, %v1654_v5  ;;  %v1718_v48 = vmax.f32 %v1590_v40, 0.0  ;;  %2292 = vst.msk [vmem:[%s4483_s6 + $0x60] sm:$0xf] %vm2267_vm2, %v2620_v41  ;;  %v1716_v54 = vmax.f32 %v1588_v44, 0.0  ;;  %v2885_v55 = vpop.f32.mrb[28].mxu1  ;;  %v1392_v56 = vmul.f32 %v3692_v34, %v958_v50  ;;  %v2822_v57 = vpop.f32.mrb[30].mxu0 }
 0x11b   :  { %v2684_v52 = vpack.c.bf16 %v1715_v42, %v1715_v42  ;;  %v2621_v53 = vpack.c.bf16 %v1652_v43, %v1652_v43  ;;  %2358 = vst.msk [vmem:[%s4483_s6 + $0x168] sm:$0xf] %vm2267_vm2, %v2686_v46  ;;  %v1529_v59 = vadd.f32 %v3697_v22, %v1394_v49  ;;  %v1458_v60 = vmul.f32 %v2885_v55, %v3692_v34  ;;  %v1214_v61 = vpop.f32.mrb[29].mxu1  ;;  %v961_v63 = vpop.f32.mrb[31].mxu0 }
 0x11c   :  { %2295 = vst.msk [vmem:[%s4483_s6 + $0x6c] sm:$0xf] %vm2267_vm2, %v2623_v47  ;;  %v2687_v58 = vpack.c.bf16 %v1718_v48, %v1718_v48  ;;  %v1395_v62 = vmul.f32 %v2822_v57, %v3692_v34  ;;  %v2685_v0 = vpack.c.bf16 %v1716_v54, %v1716_v54  ;;  %v1527_v1 = vadd.f32 %v3697_v22, %v1392_v56  ;;  %v2886_v3 = vpop.f32.mrb[30].mxu1 }
 0x11d   :  { %2356 = vst.msk [vmem:[%s4483_s6 + $0x160] sm:$0xf] %vm2267_vm2, %v2684_v52  ;;  %2293 = vst.msk [vmem:[%s4483_s6 + $0x64] sm:$0xf] %vm2267_vm2, %v2621_v53  ;;  %v1456_v2 = vmul.f32 %v3692_v34, %v1214_v61  ;;  %v1393_v6 = vmul.f32 %v3692_v34, %v961_v63  ;;  %v1657_v7 = vmax.f32 %v1529_v59, 0.0  ;;  %v1593_v8 = vadd.f32 %v3697_v22, %v1458_v60  ;;  %v1217_v11 = vpop.f32.mrb[31].mxu1 }
 0x11e   :  { %2359 = vst.msk [vmem:[%s4483_s6 + $0x16c] sm:$0xf] %vm2267_vm2, %v2687_v58  ;;  %v1530_v9 = vadd.f32 %v3697_v22, %v1395_v62  ;;  %v1459_v10 = vmul.f32 %v2886_v3, %v3692_v34  ;;  %2357 = vst.msk [vmem:[%s4483_s6 + $0x164] sm:$0xf] %vm2267_vm2, %v2685_v0  ;;  %v1655_v12 = vmax.f32 %v1527_v1, 0.0  ;;  %v1457_v15 = vmul.f32 %v3692_v34, %v1217_v11 }
 0x11f   :  { %v1591_v13 = vadd.f32 %v3697_v22, %v1456_v2  ;;  %v1528_v14 = vadd.f32 %v3697_v22, %v1393_v6  ;;  %v2626_v16 = vpack.c.bf16 %v1657_v7, %v1657_v7  ;;  %v1721_v51 = vmax.f32 %v1593_v8, 0.0 }
 0x120   :  { %v1658_v17 = vmax.f32 %v1530_v9, 0.0  ;;  %v1594_v18 = vadd.f32 %v3697_v22, %v1459_v10  ;;  %v2624_v19 = vpack.c.bf16 %v1655_v12, %v1655_v12  ;;  %v1592_v23 = vadd.f32 %v3697_v22, %v1457_v15  ;;  %v2825_v24 = vpop.f32.mrb[32].mxu0 }
 0x121   :  { %v1719_v20 = vmax.f32 %v1591_v13, 0.0  ;;  %v1656_v21 = vmax.f32 %v1528_v14, 0.0  ;;  %2298 = vst.msk [vmem:[%s4483_s6 + $0x78] sm:$0xf] %vm2267_vm2, %v2626_v16  ;;  %v2690_v25 = vpack.c.bf16 %v1721_v51, %v1721_v51  ;;  %v1398_v28 = vmul.f32 %v2825_v24, %v3692_v34  ;;  %v974_v29 = vpop.f32.mrb[33].mxu0 }
 0x122   :  { %v2627_v26 = vpack.c.bf16 %v1658_v17, %v1658_v17  ;;  %v1722_v27 = vmax.f32 %v1594_v18, 0.0  ;;  %2296 = vst.msk [vmem:[%s4483_s6 + $0x70] sm:$0xf] %vm2267_vm2, %v2624_v19  ;;  %v1720_v32 = vmax.f32 %v1592_v23, 0.0  ;;  %v2889_v33 = vpop.f32.mrb[32].mxu1  ;;  %v1396_v35 = vmul.f32 %v3692_v34, %v974_v29  ;;  %v2826_v36 = vpop.f32.mrb[34].mxu0 }
 0x123   :  { %v2688_v30 = vpack.c.bf16 %v1719_v20, %v1719_v20  ;;  %v2625_v31 = vpack.c.bf16 %v1656_v21, %v1656_v21  ;;  %2362 = vst.msk [vmem:[%s4483_s6 + $0x178] sm:$0xf] %vm2267_vm2, %v2690_v25  ;;  %v1533_v38 = vadd.f32 %v3697_v22, %v1398_v28  ;;  %v1462_v39 = vmul.f32 %v2889_v33, %v3692_v34  ;;  %v1230_v4 = vpop.f32.mrb[33].mxu1  ;;  %v977_v40 = vpop.f32.mrb[35].mxu0 }
 0x124   :  { %2299 = vst.msk [vmem:[%s4483_s6 + $0x7c] sm:$0xf] %vm2267_vm2, %v2627_v26  ;;  %v2691_v37 = vpack.c.bf16 %v1722_v27, %v1722_v27  ;;  %v1399_v5 = vmul.f32 %v2826_v36, %v3692_v34  ;;  %v2689_v41 = vpack.c.bf16 %v1720_v32, %v1720_v32  ;;  %v1531_v42 = vadd.f32 %v3697_v22, %v1396_v35  ;;  %v2890_v44 = vpop.f32.mrb[34].mxu1 }
 0x125   :  { %2360 = vst.msk [vmem:[%s4483_s6 + $0x170] sm:$0xf] %vm2267_vm2, %v2688_v30  ;;  %2297 = vst.msk [vmem:[%s4483_s6 + $0x74] sm:$0xf] %vm2267_vm2, %v2625_v31  ;;  %v1460_v43 = vmul.f32 %v3692_v34, %v1230_v4  ;;  %v1397_v45 = vmul.f32 %v3692_v34, %v977_v40  ;;  %v1661_v46 = vmax.f32 %v1533_v38, 0.0  ;;  %v1597_v47 = vadd.f32 %v3697_v22, %v1462_v39  ;;  %v1233_v50 = vpop.f32.mrb[35].mxu1 }
 0x126   :  { %2363 = vst.msk [vmem:[%s4483_s6 + $0x17c] sm:$0xf] %vm2267_vm2, %v2691_v37  ;;  %v1534_v48 = vadd.f32 %v3697_v22, %v1399_v5  ;;  %v1463_v49 = vmul.f32 %v2890_v44, %v3692_v34  ;;  %2361 = vst.msk [vmem:[%s4483_s6 + $0x174] sm:$0xf] %vm2267_vm2, %v2689_v41  ;;  %v1659_v52 = vmax.f32 %v1531_v42, 0.0  ;;  %v1461_v55 = vmul.f32 %v3692_v34, %v1233_v50 }
 0x127   :  { %v1595_v53 = vadd.f32 %v3697_v22, %v1460_v43  ;;  %v1532_v54 = vadd.f32 %v3697_v22, %v1397_v45  ;;  %v2630_v56 = vpack.c.bf16 %v1661_v46, %v1661_v46  ;;  %v1725_v57 = vmax.f32 %v1597_v47, 0.0 }
 0x128   :  { %v1662_v58 = vmax.f32 %v1534_v48, 0.0  ;;  %v1598_v59 = vadd.f32 %v3697_v22, %v1463_v49  ;;  %v2628_v60 = vpack.c.bf16 %v1659_v52, %v1659_v52  ;;  %v1596_v63 = vadd.f32 %v3697_v22, %v1461_v55  ;;  %v2829_v0 = vpop.f32.mrb[36].mxu0 }
 0x129   :  { %v1723_v61 = vmax.f32 %v1595_v53, 0.0  ;;  %v1660_v62 = vmax.f32 %v1532_v54, 0.0  ;;  %2302 = vst.msk [vmem:[%s4483_s6 + $0x88] sm:$0xf] %vm2267_vm2, %v2630_v56  ;;  %v2694_v1 = vpack.c.bf16 %v1725_v57, %v1725_v57  ;;  %v1402_v6 = vmul.f32 %v2829_v0, %v3692_v34  ;;  %v990_v7 = vpop.f32.mrb[37].mxu0 }
 0x12a   :  { %v2631_v2 = vpack.c.bf16 %v1662_v58, %v1662_v58  ;;  %v1726_v3 = vmax.f32 %v1598_v59, 0.0  ;;  %2300 = vst.msk [vmem:[%s4483_s6 + $0x80] sm:$0xf] %vm2267_vm2, %v2628_v60  ;;  %v1724_v10 = vmax.f32 %v1596_v63, 0.0  ;;  %v2893_v11 = vpop.f32.mrb[36].mxu1  ;;  %v1400_v12 = vmul.f32 %v3692_v34, %v990_v7  ;;  %v2830_v13 = vpop.f32.mrb[38].mxu0 }
 0x12b   :  { %v2692_v8 = vpack.c.bf16 %v1723_v61, %v1723_v61  ;;  %v2629_v9 = vpack.c.bf16 %v1660_v62, %v1660_v62  ;;  %2366 = vst.msk [vmem:[%s4483_s6 + $0x188] sm:$0xf] %vm2267_vm2, %v2694_v1  ;;  %v1537_v15 = vadd.f32 %v3697_v22, %v1402_v6  ;;  %v1466_v16 = vmul.f32 %v2893_v11, %v3692_v34  ;;  %v1246_v51 = vpop.f32.mrb[37].mxu1  ;;  %v993_v18 = vpop.f32.mrb[39].mxu0 }
 0x12c   :  { %2303 = vst.msk [vmem:[%s4483_s6 + $0x8c] sm:$0xf] %vm2267_vm2, %v2631_v2  ;;  %v2695_v14 = vpack.c.bf16 %v1726_v3, %v1726_v3  ;;  %v1403_v17 = vmul.f32 %v2830_v13, %v3692_v34  ;;  %v2693_v19 = vpack.c.bf16 %v1724_v10, %v1724_v10  ;;  %v1535_v20 = vadd.f32 %v3697_v22, %v1400_v12  ;;  %v2894_v23 = vpop.f32.mrb[38].mxu1 }
 0x12d   :  { %2364 = vst.msk [vmem:[%s4483_s6 + $0x180] sm:$0xf] %vm2267_vm2, %v2692_v8  ;;  %2301 = vst.msk [vmem:[%s4483_s6 + $0x84] sm:$0xf] %vm2267_vm2, %v2629_v9  ;;  %v1464_v21 = vmul.f32 %v3692_v34, %v1246_v51  ;;  %v1401_v24 = vmul.f32 %v3692_v34, %v993_v18  ;;  %v1665_v25 = vmax.f32 %v1537_v15, 0.0  ;;  %v1601_v26 = vadd.f32 %v3697_v22, %v1466_v16  ;;  %v1249_v29 = vpop.f32.mrb[39].mxu1 }
 0x12e   :  { %2367 = vst.msk [vmem:[%s4483_s6 + $0x18c] sm:$0xf] %vm2267_vm2, %v2695_v14  ;;  %v1538_v27 = vadd.f32 %v3697_v22, %v1403_v17  ;;  %v1467_v28 = vmul.f32 %v2894_v23, %v3692_v34  ;;  %2365 = vst.msk [vmem:[%s4483_s6 + $0x184] sm:$0xf] %vm2267_vm2, %v2693_v19  ;;  %v1663_v30 = vmax.f32 %v1535_v20, 0.0  ;;  %v1465_v33 = vmul.f32 %v3692_v34, %v1249_v29 }
 0x12f   :  { %v1599_v31 = vadd.f32 %v3697_v22, %v1464_v21  ;;  %v1536_v32 = vadd.f32 %v3697_v22, %v1401_v24  ;;  %v2634_v35 = vpack.c.bf16 %v1665_v25, %v1665_v25  ;;  %v1729_v36 = vmax.f32 %v1601_v26, 0.0  ;;  %v4197_v18 = vld [vmem:[%s4482_s5] ss:$0 sm:$0xff] }
 0x130   :  { %v1666_v37 = vmax.f32 %v1538_v27, 0.0  ;;  %v1602_v38 = vadd.f32 %v3697_v22, %v1467_v28  ;;  %v2632_v39 = vpack.c.bf16 %v1663_v30, %v1663_v30  ;;  %v1600_v40 = vadd.f32 %v3697_v22, %v1465_v33  ;;  %v2833_v41 = vpop.f32.mrb[40].mxu0 }
 0x131   :  { %v1727_v4 = vmax.f32 %v1599_v31, 0.0  ;;  %v1664_v5 = vmax.f32 %v1536_v32, 0.0  ;;  %2306 = vst.msk [vmem:[%s4483_s6 + $0x98] sm:$0xf] %vm2267_vm2, %v2634_v35  ;;  %v2698_v42 = vpack.c.bf16 %v1729_v36, %v1729_v36  ;;  %v1406_v45 = vmul.f32 %v2833_v41, %v3692_v34  ;;  %v1006_v46 = vpop.f32.mrb[41].mxu0 }
 0x132   :  { %v2635_v43 = vpack.c.bf16 %v1666_v37, %v1666_v37  ;;  %v1730_v44 = vmax.f32 %v1602_v38, 0.0  ;;  %2304 = vst.msk [vmem:[%s4483_s6 + $0x90] sm:$0xf] %vm2267_vm2, %v2632_v39  ;;  %v1728_v49 = vmax.f32 %v1600_v40, 0.0  ;;  %v2897_v50 = vpop.f32.mrb[40].mxu1  ;;  %v1404_v52 = vmul.f32 %v3692_v34, %v1006_v46  ;;  %v2834_v53 = vpop.f32.mrb[42].mxu0 }
 0x133   :  { %v2696_v47 = vpack.c.bf16 %v1727_v4, %v1727_v4  ;;  %v2633_v48 = vpack.c.bf16 %v1664_v5, %v1664_v5  ;;  %2370 = vst.msk [vmem:[%s4483_s6 + $0x198] sm:$0xf] %vm2267_vm2, %v2698_v42  ;;  %v1541_v55 = vadd.f32 %v3697_v22, %v1406_v45  ;;  %v1470_v56 = vmul.f32 %v2897_v50, %v3692_v34  ;;  %v1262_v57 = vpop.f32.mrb[41].mxu1  ;;  %v1009_v59 = vpop.f32.mrb[43].mxu0 }
 0x134   :  { %2307 = vst.msk [vmem:[%s4483_s6 + $0x9c] sm:$0xf] %vm2267_vm2, %v2635_v43  ;;  %v2699_v54 = vpack.c.bf16 %v1730_v44, %v1730_v44  ;;  %v1407_v58 = vmul.f32 %v2834_v53, %v3692_v34  ;;  %v2697_v60 = vpack.c.bf16 %v1728_v49, %v1728_v49  ;;  %v1539_v61 = vadd.f32 %v3697_v22, %v1404_v52  ;;  %v2898_v63 = vpop.f32.mrb[42].mxu1 }
 0x135   :  { %2368 = vst.msk [vmem:[%s4483_s6 + $0x190] sm:$0xf] %vm2267_vm2, %v2696_v47  ;;  %2305 = vst.msk [vmem:[%s4483_s6 + $0x94] sm:$0xf] %vm2267_vm2, %v2633_v48  ;;  %v1468_v62 = vmul.f32 %v3692_v34, %v1262_v57  ;;  %v1405_v0 = vmul.f32 %v3692_v34, %v1009_v59  ;;  %v1669_v1 = vmax.f32 %v1541_v55, 0.0  ;;  %v1605_v2 = vadd.f32 %v3697_v22, %v1470_v56  ;;  %v1265_v7 = vpop.f32.mrb[43].mxu1 }
 0x136   :  { %2371 = vst.msk [vmem:[%s4483_s6 + $0x19c] sm:$0xf] %vm2267_vm2, %v2699_v54  ;;  %v1542_v3 = vadd.f32 %v3697_v22, %v1407_v58  ;;  %v1471_v6 = vmul.f32 %v2898_v63, %v3692_v34  ;;  %2369 = vst.msk [vmem:[%s4483_s6 + $0x194] sm:$0xf] %vm2267_vm2, %v2697_v60  ;;  %v1667_v8 = vmax.f32 %v1539_v61, 0.0  ;;  %v1469_v11 = vmul.f32 %v3692_v34, %v1265_v7 }
 0x137   :  { %v1603_v9 = vadd.f32 %v3697_v22, %v1468_v62  ;;  %v1540_v10 = vadd.f32 %v3697_v22, %v1405_v0  ;;  %v2638_v12 = vpack.c.bf16 %v1669_v1, %v1669_v1  ;;  %v1733_v13 = vmax.f32 %v1605_v2, 0.0 }
 0x138   :  { %v1670_v14 = vmax.f32 %v1542_v3, 0.0  ;;  %v1606_v15 = vadd.f32 %v3697_v22, %v1471_v6  ;;  %v2636_v16 = vpack.c.bf16 %v1667_v8, %v1667_v8  ;;  %v1604_v19 = vadd.f32 %v4197_v18, %v1469_v11  ;;  %v2837_v20 = vpop.f32.mrb[44].mxu0  ;;  %v4207_v22 = vld [vmem:[%s4481_s4] ss:$0 sm:$0xff] }
 0x139   :  { %v1731_v51 = vmax.f32 %v1603_v9, 0.0  ;;  %v1668_v17 = vmax.f32 %v1540_v10, 0.0  ;;  %2310 = vst.msk [vmem:[%s4483_s6 + $0xa8] sm:$0xf] %vm2267_vm2, %v2638_v12  ;;  %v2702_v34 = vpack.c.bf16 %v1733_v13, %v1733_v13  ;;  %v1410_v24 = vmul.f32 %v4207_v22, %v2837_v20  ;;  %v1022_v25 = vpop.f32.mrb[45].mxu0 }
 0x13a   :  { %v2639_v21 = vpack.c.bf16 %v1670_v14, %v1670_v14  ;;  %v1734_v23 = vmax.f32 %v1606_v15, 0.0  ;;  %2308 = vst.msk [vmem:[%s4483_s6 + $0xa0] sm:$0xf] %vm2267_vm2, %v2636_v16  ;;  %v1732_v28 = vmax.f32 %v1604_v19, 0.0  ;;  %v2901_v29 = vpop.f32.mrb[44].mxu1  ;;  %v1408_v30 = vmul.f32 %v4207_v22, %v1022_v25  ;;  %v2838_v31 = vpop.f32.mrb[46].mxu0 }
 0x13b   :  { %v2700_v26 = vpack.c.bf16 %v1731_v51, %v1731_v51  ;;  %v2637_v27 = vpack.c.bf16 %v1668_v17, %v1668_v17  ;;  %2374 = vst.msk [vmem:[%s4483_s6 + $0x1a8] sm:$0xf] %vm2267_vm2, %v2702_v34  ;;  %v1545_v33 = vadd.f32 %v4197_v18, %v1410_v24  ;;  %v1474_v35 = vmul.f32 %v4207_v22, %v2901_v29  ;;  %v1278_v36 = vpop.f32.mrb[45].mxu1  ;;  %v1025_v38 = vpop.f32.mrb[47].mxu0 }
 0x13c   :  { %2311 = vst.msk [vmem:[%s4483_s6 + $0xac] sm:$0xf] %vm2267_vm2, %v2639_v21  ;;  %v2703_v32 = vpack.c.bf16 %v1734_v23, %v1734_v23  ;;  %v1411_v37 = vmul.f32 %v4207_v22, %v2838_v31  ;;  %v2701_v39 = vpack.c.bf16 %v1732_v28, %v1732_v28  ;;  %v1543_v4 = vadd.f32 %v4197_v18, %v1408_v30  ;;  %v2902_v40 = vpop.f32.mrb[46].mxu1 }
 0x13d   :  { %2372 = vst.msk [vmem:[%s4483_s6 + $0x1a0] sm:$0xf] %vm2267_vm2, %v2700_v26  ;;  %2309 = vst.msk [vmem:[%s4483_s6 + $0xa4] sm:$0xf] %vm2267_vm2, %v2637_v27  ;;  %v1472_v5 = vmul.f32 %v4207_v22, %v1278_v36  ;;  %v1409_v41 = vmul.f32 %v4207_v22, %v1025_v38  ;;  %v1673_v42 = vmax.f32 %v1545_v33, 0.0  ;;  %v1609_v43 = vadd.f32 %v4197_v18, %v1474_v35  ;;  %v1281_v46 = vpop.f32.mrb[47].mxu1 }
 0x13e   :  { %2375 = vst.msk [vmem:[%s4483_s6 + $0x1ac] sm:$0xf] %vm2267_vm2, %v2703_v32  ;;  %v1546_v44 = vadd.f32 %v4197_v18, %v1411_v37  ;;  %v1475_v45 = vmul.f32 %v4207_v22, %v2902_v40  ;;  %2373 = vst.msk [vmem:[%s4483_s6 + $0x1a4] sm:$0xf] %vm2267_vm2, %v2701_v39  ;;  %v1671_v47 = vmax.f32 %v1543_v4, 0.0  ;;  %v1473_v50 = vmul.f32 %v4207_v22, %v1281_v46 }
 0x13f   :  { %v1607_v48 = vadd.f32 %v4197_v18, %v1472_v5  ;;  %v1544_v49 = vadd.f32 %v4197_v18, %v1409_v41  ;;  %v2642_v52 = vpack.c.bf16 %v1673_v42, %v1673_v42  ;;  %v1737_v53 = vmax.f32 %v1609_v43, 0.0 }
 0x140   :  { %v1674_v54 = vmax.f32 %v1546_v44, 0.0  ;;  %v1610_v55 = vadd.f32 %v4197_v18, %v1475_v45  ;;  %v2640_v56 = vpack.c.bf16 %v1671_v47, %v1671_v47  ;;  %v1608_v59 = vadd.f32 %v4197_v18, %v1473_v50  ;;  %v2841_v60 = vpop.f32.mrb[48].mxu0 }
 0x141   :  { %v1735_v57 = vmax.f32 %v1607_v48, 0.0  ;;  %v1672_v58 = vmax.f32 %v1544_v49, 0.0  ;;  %2314 = vst.msk [vmem:[%s4483_s6 + $0xb8] sm:$0xf] %vm2267_vm2, %v2642_v52  ;;  %v2706_v61 = vpack.c.bf16 %v1737_v53, %v1737_v53  ;;  %v1414_v0 = vmul.f32 %v4207_v22, %v2841_v60  ;;  %v1038_v1 = vpop.f32.mrb[49].mxu0 }
 0x142   :  { %v2643_v62 = vpack.c.bf16 %v1674_v54, %v1674_v54  ;;  %v1738_v63 = vmax.f32 %v1610_v55, 0.0  ;;  %2312 = vst.msk [vmem:[%s4483_s6 + $0xb0] sm:$0xf] %vm2267_vm2, %v2640_v56  ;;  %v1736_v6 = vmax.f32 %v1608_v59, 0.0  ;;  %v2905_v7 = vpop.f32.mrb[48].mxu1  ;;  %v1412_v8 = vmul.f32 %v4207_v22, %v1038_v1  ;;  %v2842_v9 = vpop.f32.mrb[50].mxu0 }
 0x143   :  { %v2704_v2 = vpack.c.bf16 %v1735_v57, %v1735_v57  ;;  %v2641_v3 = vpack.c.bf16 %v1672_v58, %v1672_v58  ;;  %2378 = vst.msk [vmem:[%s4483_s6 + $0x1b8] sm:$0xf] %vm2267_vm2, %v2706_v61  ;;  %v1549_v11 = vadd.f32 %v4197_v18, %v1414_v0  ;;  %v1478_v12 = vmul.f32 %v4207_v22, %v2905_v7  ;;  %v1294_v13 = vpop.f32.mrb[49].mxu1  ;;  %v1041_v15 = vpop.f32.mrb[51].mxu0 }
 0x144   :  { %2315 = vst.msk [vmem:[%s4483_s6 + $0xbc] sm:$0xf] %vm2267_vm2, %v2643_v62  ;;  %v2707_v10 = vpack.c.bf16 %v1738_v63, %v1738_v63  ;;  %v1415_v14 = vmul.f32 %v4207_v22, %v2842_v9  ;;  %v2705_v16 = vpack.c.bf16 %v1736_v6, %v1736_v6  ;;  %v1547_v51 = vadd.f32 %v4197_v18, %v1412_v8  ;;  %v2906_v19 = vpop.f32.mrb[50].mxu1 }
 0x145   :  { %2376 = vst.msk [vmem:[%s4483_s6 + $0x1b0] sm:$0xf] %vm2267_vm2, %v2704_v2  ;;  %2313 = vst.msk [vmem:[%s4483_s6 + $0xb4] sm:$0xf] %vm2267_vm2, %v2641_v3  ;;  %v1476_v17 = vmul.f32 %v4207_v22, %v1294_v13  ;;  %v1413_v20 = vmul.f32 %v4207_v22, %v1041_v15  ;;  %v1677_v34 = vmax.f32 %v1549_v11, 0.0  ;;  %v1613_v21 = vadd.f32 %v4197_v18, %v1478_v12  ;;  %v1297_v25 = vpop.f32.mrb[51].mxu1 }
 0x146   :  { %2379 = vst.msk [vmem:[%s4483_s6 + $0x1bc] sm:$0xf] %vm2267_vm2, %v2707_v10  ;;  %v1550_v23 = vadd.f32 %v4197_v18, %v1415_v14  ;;  %v1479_v24 = vmul.f32 %v4207_v22, %v2906_v19  ;;  %2377 = vst.msk [vmem:[%s4483_s6 + $0x1b4] sm:$0xf] %vm2267_vm2, %v2705_v16  ;;  %v1675_v26 = vmax.f32 %v1547_v51, 0.0  ;;  %v1477_v29 = vmul.f32 %v4207_v22, %v1297_v25 }
 0x147   :  { %v1611_v27 = vadd.f32 %v4197_v18, %v1476_v17  ;;  %v1548_v28 = vadd.f32 %v4197_v18, %v1413_v20  ;;  %v2646_v30 = vpack.c.bf16 %v1677_v34, %v1677_v34  ;;  %v1741_v31 = vmax.f32 %v1613_v21, 0.0 }
 0x148   :  { %v1678_v32 = vmax.f32 %v1550_v23, 0.0  ;;  %v1614_v33 = vadd.f32 %v4197_v18, %v1479_v24  ;;  %v2644_v35 = vpack.c.bf16 %v1675_v26, %v1675_v26  ;;  %v1612_v38 = vadd.f32 %v4197_v18, %v1477_v29  ;;  %v2845_v39 = vpop.f32.mrb[52].mxu0 }
 0x149   :  { %v1739_v36 = vmax.f32 %v1611_v27, 0.0  ;;  %v1676_v37 = vmax.f32 %v1548_v28, 0.0  ;;  %2318 = vst.msk [vmem:[%s4483_s6 + $0xc8] sm:$0xf] %vm2267_vm2, %v2646_v30  ;;  %v2710_v4 = vpack.c.bf16 %v1741_v31, %v1741_v31  ;;  %v1418_v41 = vmul.f32 %v4207_v22, %v2845_v39  ;;  %v1054_v42 = vpop.f32.mrb[53].mxu0 }
 0x14a   :  { %v2647_v5 = vpack.c.bf16 %v1678_v32, %v1678_v32  ;;  %v1742_v40 = vmax.f32 %v1614_v33, 0.0  ;;  %2316 = vst.msk [vmem:[%s4483_s6 + $0xc0] sm:$0xf] %vm2267_vm2, %v2644_v35  ;;  %v1740_v45 = vmax.f32 %v1612_v38, 0.0  ;;  %v2909_v46 = vpop.f32.mrb[52].mxu1  ;;  %v1416_v47 = vmul.f32 %v4207_v22, %v1054_v42  ;;  %v2846_v48 = vpop.f32.mrb[54].mxu0 }
 0x14b   :  { %v2708_v43 = vpack.c.bf16 %v1739_v36, %v1739_v36  ;;  %v2645_v44 = vpack.c.bf16 %v1676_v37, %v1676_v37  ;;  %2382 = vst.msk [vmem:[%s4483_s6 + $0x1c8] sm:$0xf] %vm2267_vm2, %v2710_v4  ;;  %v1553_v50 = vadd.f32 %v4197_v18, %v1418_v41  ;;  %v1482_v52 = vmul.f32 %v4207_v22, %v2909_v46  ;;  %v1310_v53 = vpop.f32.mrb[53].mxu1  ;;  %v1057_v55 = vpop.f32.mrb[55].mxu0 }
 0x14c   :  { %2319 = vst.msk [vmem:[%s4483_s6 + $0xcc] sm:$0xf] %vm2267_vm2, %v2647_v5  ;;  %v2711_v49 = vpack.c.bf16 %v1742_v40, %v1742_v40  ;;  %v1419_v54 = vmul.f32 %v4207_v22, %v2846_v48  ;;  %v2709_v56 = vpack.c.bf16 %v1740_v45, %v1740_v45  ;;  %v1551_v57 = vadd.f32 %v4197_v18, %v1416_v47  ;;  %v2910_v59 = vpop.f32.mrb[54].mxu1 }
 0x14d   :  { %2380 = vst.msk [vmem:[%s4483_s6 + $0x1c0] sm:$0xf] %vm2267_vm2, %v2708_v43  ;;  %2317 = vst.msk [vmem:[%s4483_s6 + $0xc4] sm:$0xf] %vm2267_vm2, %v2645_v44  ;;  %v1480_v58 = vmul.f32 %v4207_v22, %v1310_v53  ;;  %v1417_v60 = vmul.f32 %v4207_v22, %v1057_v55  ;;  %v1681_v61 = vmax.f32 %v1553_v50, 0.0  ;;  %v1617_v62 = vadd.f32 %v4197_v18, %v1482_v52  ;;  %v1313_v1 = vpop.f32.mrb[55].mxu1 }
 0x14e   :  { %2383 = vst.msk [vmem:[%s4483_s6 + $0x1cc] sm:$0xf] %vm2267_vm2, %v2711_v49  ;;  %v1554_v63 = vadd.f32 %v4197_v18, %v1419_v54  ;;  %v1483_v0 = vmul.f32 %v4207_v22, %v2910_v59  ;;  %2381 = vst.msk [vmem:[%s4483_s6 + $0x1c4] sm:$0xf] %vm2267_vm2, %v2709_v56  ;;  %v1679_v2 = vmax.f32 %v1551_v57, 0.0  ;;  %v1481_v7 = vmul.f32 %v4207_v22, %v1313_v1 }
 0x14f   :  { %v1615_v3 = vadd.f32 %v4197_v18, %v1480_v58  ;;  %v1552_v6 = vadd.f32 %v4197_v18, %v1417_v60  ;;  %v2650_v8 = vpack.c.bf16 %v1681_v61, %v1681_v61  ;;  %v1745_v9 = vmax.f32 %v1617_v62, 0.0 }
 0x150   :  { %v1682_v10 = vmax.f32 %v1554_v63, 0.0  ;;  %v1618_v11 = vadd.f32 %v4197_v18, %v1483_v0  ;;  %v2648_v12 = vpack.c.bf16 %v1679_v2, %v1679_v2  ;;  %v1616_v15 = vadd.f32 %v4197_v18, %v1481_v7  ;;  %v2849_v16 = vpop.f32.mrb[56].mxu0 }
 0x151   :  { %v1743_v13 = vmax.f32 %v1615_v3, 0.0  ;;  %v1680_v14 = vmax.f32 %v1552_v6, 0.0  ;;  %2322 = vst.msk [vmem:[%s4483_s6 + $0xd8] sm:$0xf] %vm2267_vm2, %v2650_v8  ;;  %v2714_v51 = vpack.c.bf16 %v1745_v9, %v1745_v9  ;;  %v1422_v20 = vmul.f32 %v4207_v22, %v2849_v16  ;;  %v1070_v34 = vpop.f32.mrb[57].mxu0 }
 0x152   :  { %v2651_v17 = vpack.c.bf16 %v1682_v10, %v1682_v10  ;;  %v1746_v19 = vmax.f32 %v1618_v11, 0.0  ;;  %2320 = vst.msk [vmem:[%s4483_s6 + $0xd0] sm:$0xf] %vm2267_vm2, %v2648_v12  ;;  %v1744_v24 = vmax.f32 %v1616_v15, 0.0  ;;  %v2913_v25 = vpop.f32.mrb[56].mxu1  ;;  %v1420_v26 = vmul.f32 %v4207_v22, %v1070_v34  ;;  %v2850_v27 = vpop.f32.mrb[58].mxu0 }
 0x153   :  { %v2712_v21 = vpack.c.bf16 %v1743_v13, %v1743_v13  ;;  %v2649_v23 = vpack.c.bf16 %v1680_v14, %v1680_v14  ;;  %2386 = vst.msk [vmem:[%s4483_s6 + $0x1d8] sm:$0xf] %vm2267_vm2, %v2714_v51  ;;  %v1557_v29 = vadd.f32 %v4197_v18, %v1422_v20  ;;  %v1486_v30 = vmul.f32 %v4207_v22, %v2913_v25  ;;  %v1326_v31 = vpop.f32.mrb[57].mxu1  ;;  %v1073_v33 = vpop.f32.mrb[59].mxu0 }
 0x154   :  { %2323 = vst.msk [vmem:[%s4483_s6 + $0xdc] sm:$0xf] %vm2267_vm2, %v2651_v17  ;;  %v2715_v28 = vpack.c.bf16 %v1746_v19, %v1746_v19  ;;  %v1423_v32 = vmul.f32 %v4207_v22, %v2850_v27  ;;  %v2713_v35 = vpack.c.bf16 %v1744_v24, %v1744_v24  ;;  %v1555_v36 = vadd.f32 %v4197_v18, %v1420_v26  ;;  %v2914_v38 = vpop.f32.mrb[58].mxu1 }
 0x155   :  { %2384 = vst.msk [vmem:[%s4483_s6 + $0x1d0] sm:$0xf] %vm2267_vm2, %v2712_v21  ;;  %2321 = vst.msk [vmem:[%s4483_s6 + $0xd4] sm:$0xf] %vm2267_vm2, %v2649_v23  ;;  %v1484_v37 = vmul.f32 %v4207_v22, %v1326_v31  ;;  %v1421_v39 = vmul.f32 %v4207_v22, %v1073_v33  ;;  %v1685_v4 = vmax.f32 %v1557_v29, 0.0  ;;  %v1621_v5 = vadd.f32 %v4197_v18, %v1486_v30  ;;  %v1329_v42 = vpop.f32.mrb[59].mxu1 }
 0x156   :  { %2387 = vst.msk [vmem:[%s4483_s6 + $0x1dc] sm:$0xf] %vm2267_vm2, %v2715_v28  ;;  %v1558_v40 = vadd.f32 %v4197_v18, %v1423_v32  ;;  %v1487_v41 = vmul.f32 %v4207_v22, %v2914_v38  ;;  %2385 = vst.msk [vmem:[%s4483_s6 + $0x1d4] sm:$0xf] %vm2267_vm2, %v2713_v35  ;;  %v1683_v43 = vmax.f32 %v1555_v36, 0.0  ;;  %v1485_v46 = vmul.f32 %v4207_v22, %v1329_v42 }
 0x157   :  { %v1619_v44 = vadd.f32 %v4197_v18, %v1484_v37  ;;  %v1556_v45 = vadd.f32 %v4197_v18, %v1421_v39  ;;  %v2654_v47 = vpack.c.bf16 %v1685_v4, %v1685_v4  ;;  %v1749_v48 = vmax.f32 %v1621_v5, 0.0 }
 0x158   :  { %v1686_v49 = vmax.f32 %v1558_v40, 0.0  ;;  %v1622_v50 = vadd.f32 %v4197_v18, %v1487_v41  ;;  %v2652_v52 = vpack.c.bf16 %v1683_v43, %v1683_v43  ;;  %v1620_v55 = vadd.f32 %v4197_v18, %v1485_v46  ;;  %v2853_v56 = vpop.f32.mrb[60].mxu0 }
 0x159   :  { %v1747_v53 = vmax.f32 %v1619_v44, 0.0  ;;  %v1684_v54 = vmax.f32 %v1556_v45, 0.0  ;;  %2326 = vst.msk [vmem:[%s4483_s6 + $0xe8] sm:$0xf] %vm2267_vm2, %v2654_v47  ;;  %v2718_v57 = vpack.c.bf16 %v1749_v48, %v1749_v48  ;;  %v1426_v60 = vmul.f32 %v4207_v22, %v2853_v56  ;;  %v1086_v61 = vpop.f32.mrb[61].mxu0 }
 0x15a   :  { %v2655_v58 = vpack.c.bf16 %v1686_v49, %v1686_v49  ;;  %v1750_v59 = vmax.f32 %v1622_v50, 0.0  ;;  %2324 = vst.msk [vmem:[%s4483_s6 + $0xe0] sm:$0xf] %vm2267_vm2, %v2652_v52  ;;  %v1748_v0 = vmax.f32 %v1620_v55, 0.0  ;;  %v2917_v1 = vpop.f32.mrb[60].mxu1  ;;  %v1424_v2 = vmul.f32 %v4207_v22, %v1086_v61  ;;  %v2854_v3 = vpop.f32.mrb[62].mxu0 }
 0x15b   :  { %v2716_v62 = vpack.c.bf16 %v1747_v53, %v1747_v53  ;;  %v2653_v63 = vpack.c.bf16 %v1684_v54, %v1684_v54  ;;  %2390 = vst.msk [vmem:[%s4483_s6 + $0x1e8] sm:$0xf] %vm2267_vm2, %v2718_v57  ;;  %v1561_v7 = vadd.f32 %v4197_v18, %v1426_v60  ;;  %v1490_v8 = vmul.f32 %v4207_v22, %v2917_v1  ;;  %v1342_v9 = vpop.f32.mrb[61].mxu1  ;;  %v1089_v11 = vpop.f32.mrb[63].mxu0 }
 0x15c   :  { %2327 = vst.msk [vmem:[%s4483_s6 + $0xec] sm:$0xf] %vm2267_vm2, %v2655_v58  ;;  %v2719_v6 = vpack.c.bf16 %v1750_v59, %v1750_v59  ;;  %v1427_v10 = vmul.f32 %v4207_v22, %v2854_v3  ;;  %v2717_v12 = vpack.c.bf16 %v1748_v0, %v1748_v0  ;;  %v1559_v13 = vadd.f32 %v4197_v18, %v1424_v2  ;;  %v2918_v15 = vpop.f32.mrb[62].mxu1 }
 0x15d   :  { %2388 = vst.msk [vmem:[%s4483_s6 + $0x1e0] sm:$0xf] %vm2267_vm2, %v2716_v62  ;;  %2325 = vst.msk [vmem:[%s4483_s6 + $0xe4] sm:$0xf] %vm2267_vm2, %v2653_v63  ;;  %v1488_v14 = vmul.f32 %v4207_v22, %v1342_v9  ;;  %v1425_v16 = vmul.f32 %v4207_v22, %v1089_v11  ;;  %v1689_v51 = vmax.f32 %v1561_v7, 0.0  ;;  %v1625_v17 = vadd.f32 %v4197_v18, %v1490_v8  ;;  %v1345_v34 = vpop.f32.mrb[63].mxu1 }
 0x15e   :  { %2391 = vst.msk [vmem:[%s4483_s6 + $0x1ec] sm:$0xf] %vm2267_vm2, %v2719_v6  ;;  %v1562_v19 = vadd.f32 %v4197_v18, %v1427_v10  ;;  %v1491_v20 = vmul.f32 %v4207_v22, %v2918_v15  ;;  %2389 = vst.msk [vmem:[%s4483_s6 + $0x1e4] sm:$0xf] %vm2267_vm2, %v2717_v12  ;;  %v1687_v21 = vmax.f32 %v1559_v13, 0.0  ;;  %v1489_v25 = vmul.f32 %v4207_v22, %v1345_v34 }
 0x15f   :  { %v1623_v23 = vadd.f32 %v4197_v18, %v1488_v14  ;;  %v1560_v24 = vadd.f32 %v4197_v18, %v1425_v16  ;;  %v2658_v26 = vpack.c.bf16 %v1689_v51, %v1689_v51  ;;  %v1753_v27 = vmax.f32 %v1625_v17, 0.0 }
 0x160   :  { %v1690_v28 = vmax.f32 %v1562_v19, 0.0  ;;  %v1626_v29 = vadd.f32 %v4197_v18, %v1491_v20  ;;  %v2656_v30 = vpack.c.bf16 %v1687_v21, %v1687_v21  ;;  %v1624_v33 = vadd.f32 %v4197_v18, %v1489_v25 }
 0x161   :  { %v1751_v31 = vmax.f32 %v1623_v23, 0.0  ;;  %v1688_v32 = vmax.f32 %v1560_v24, 0.0  ;;  %2330 = vst.msk [vmem:[%s4483_s6 + $0xf8] sm:$0xf] %vm2267_vm2, %v2658_v26  ;;  %v2722_v35 = vpack.c.bf16 %v1753_v27, %v1753_v27 }
 0x162   :  { %v2659_v36 = vpack.c.bf16 %v1690_v28, %v1690_v28  ;;  %v1754_v37 = vmax.f32 %v1626_v29, 0.0  ;;  %2328 = vst.msk [vmem:[%s4483_s6 + $0xf0] sm:$0xf] %vm2267_vm2, %v2656_v30  ;;  %v1752_v39 = vmax.f32 %v1624_v33, 0.0 }
 0x163   :  { %v2720_v22 = vpack.c.bf16 %v1751_v31, %v1751_v31  ;;  %v2657_v38 = vpack.c.bf16 %v1688_v32, %v1688_v32  ;;  %2394 = vst.msk [vmem:[%s4483_s6 + $0x1f8] sm:$0xf] %vm2267_vm2, %v2722_v35 }
 0x164   :  { %2331 = vst.msk [vmem:[%s4483_s6 + $0xfc] sm:$0xf] %vm2267_vm2, %v2659_v36  ;;  %v2723_v18 = vpack.c.bf16 %v1754_v37, %v1754_v37  ;;  %v2721_v4 = vpack.c.bf16 %v1752_v39, %v1752_v39 }
 0x165   :  { %2392 = vst.msk [vmem:[%s4483_s6 + $0x1f0] sm:$0xf] %vm2267_vm2, %v2720_v22  ;;  %2329 = vst.msk [vmem:[%s4483_s6 + $0xf4] sm:$0xf] %vm2267_vm2, %v2657_v38 }
 0x166   :  { %2395 = vst.msk [vmem:[%s4483_s6 + $0x1fc] sm:$0xf] %vm2267_vm2, %v2723_v18  ;;  %2393 = vst.msk [vmem:[%s4483_s6 + $0x1f4] sm:$0xf] %vm2267_vm2, %v2721_v4 }

</bundles_post_ra>
